<compile_context>
chip_gen: v6e
topology: v6e:2x2x1
jax: 0.10.0
libtpu: 0.0.40
codegen_flags: <defaults>
</compile_context>

<pallas_src>
import functools

import jax
import jax.numpy as jnp
from jax.experimental import pallas as pl
from jax.experimental.pallas import tpu as pltpu


def _lstm_cell_attn_kernel(
    x_ref,      # (bb, seq, D)      f32
    w1_ref,     # (D, d_a)          f32   linear_first weight (transposed)
    b1_ref,     # (1, d_a)          f32
    w2_ref,     # (d_a, r)          f32   linear_second weight (transposed)
    b2_ref,     # (1, r)            f32
    wi_ref,     # (D, 4H)           f32   weight_iBarh
    wh_ref,     # (H, 4H)           f32   weight_hh
    bias_ref,   # (1, 4H)           f32
    hseq_ref,   # (bb, seq, H)      f32   out: hidden sequence
    hT_ref,     # (bb, 1, H)        f32   out: final h
    cT_ref,     # (bb, 1, H)        f32   out: final c
    attn_ref,   # (bb, r, seq)      f32   out: last-step attention
    gx_ref,     # (bb, seq, 4H)     f32   VMEM scratch: h-independent gate half
    *, hidden_size, r_heads,
):
    bb, seq, D = x_ref.shape
    H = hidden_size
    r = r_heads

    # ---- loop-invariant loads: once, outside the recurrence --------------------
    xs = x_ref[...]                                   # (bb, seq, D)
    w1 = w1_ref[...]
    b1 = b1_ref[...]
    w2 = w2_ref[...]
    b2 = b2_ref[...]
    wi = wi_ref[...]
    wh = wh_ref[...]
    bias = bias_ref[...]

    # ---- attention logits for all (b, s): two batched MXU matmuls --------------
    x2 = xs.reshape(bb * seq, D)
    h1 = jnp.tanh(jnp.dot(x2, w1, preferred_element_type=jnp.float32) + b1)
    scores = jnp.dot(h1, w2, preferred_element_type=jnp.float32) + b2   # (bb*seq, r)
    # lane-dense layout for softmax / output: (bb, r, seq) with seq on lanes
    scores = jnp.transpose(scores.reshape(bb, seq, r), (0, 2, 1))       # (bb, r, seq)

    # ---- causal prefix softmax for every step t at once -------------------------
    # attn4[b, h, t, s] = softmax_{s <= t}(scores[b, h, s])
    t_idx = jax.lax.broadcasted_iota(jnp.int32, (seq, seq), 0)
    s_idx = jax.lax.broadcasted_iota(jnp.int32, (seq, seq), 1)
    causal = (s_idx <= t_idx)[None, None, :, :]                         # (1,1,T,S)
    logits = scores[:, :, None, :]                                      # (bb,r,1,S)
    # single masked-logits select; masked exp underflows cleanly to 0, so no
    # second where is needed (every prefix row has at least one valid entry).
    ml = jnp.where(causal, logits, jnp.float32(-1e30))                  # (bb,r,T,S)
    mmax = jnp.max(ml, axis=-1, keepdims=True)                          # (bb,r,T,1)
    e = jnp.exp(ml - mmax)                                              # (bb,r,T,S)
    denom = jnp.sum(e, axis=-1, keepdims=True)                          # (bb,r,T,1)
    attn4 = e * pl.reciprocal(denom, approx=True)                       # (bb,r,T,S)

    # returned attention == attention of the last step (full-length prefix);
    # stored exactly once.
    attn_ref[...] = attn4[:, :, seq - 1, :]                             # (bb, r, seq)

    # per-position combined weight: mean over the r attention heads
    wsum = jnp.sum(attn4, axis=1) * jnp.float32(1.0 / r)                # (bb, T, S)

    # M for every step, then the h-independent half of the gates as ONE matmul
    m_all = jnp.einsum("bts,bsd->btd", wsum, xs,
                       preferred_element_type=jnp.float32)              # (bb, seq, D)
    gates_x = jnp.dot(m_all.reshape(bb * seq, D), wi,
                      preferred_element_type=jnp.float32) + bias        # (bb*seq, 4H)
    gx_ref[...] = gates_x.reshape(bb, seq, 4 * H)

    # ---- serial recurrence: only h @ wh + element-wise gate math ---------------
    def step(t, carry):
        h, c = carry                                                    # (bb, H) each
        g = gx_ref[:, pl.ds(t, 1), :].reshape(bb, 4 * H)
        g = g + jnp.dot(h, wh, preferred_element_type=jnp.float32)      # (bb, 4H)
        i_t = jax.nn.sigmoid(g[:, 0 * H:1 * H])
        f_t = jax.nn.sigmoid(g[:, 1 * H:2 * H])
        g_t = jnp.tanh(g[:, 2 * H:3 * H])
        o_t = jax.nn.sigmoid(g[:, 3 * H:4 * H])
        c_new = f_t * c + i_t * g_t
        h_new = o_t * jnp.tanh(c_new)
        hseq_ref[:, pl.ds(t, 1), :] = h_new[:, None, :]
        return h_new, c_new

    h0 = jnp.zeros((bb, H), jnp.float32)
    c0 = jnp.zeros((bb, H), jnp.float32)
    # Full unroll for short sequences gives the LLO scheduler visibility across
    # the whole recurrence; cap the unroll for long sequences to bound code size.
    unroll = seq if seq <= 32 else 8
    h_fin, c_fin = jax.lax.fori_loop(0, seq, step, (h0, c0), unroll=unroll)
    hT_ref[...] = h_fin[:, None, :]
    cT_ref[...] = c_fin[:, None, :]


def lstm_with_input_cell_attention(x, params, *, batch_block=None):
    """x: (bs, seq, input_sz) f32. Returns (hidden_seq, (h_T, c_T), attention)
    with PyTorch layouts: (bs, seq, H), ((bs, H), (bs, H)), (bs, r, seq)."""
    w1, b1, w2, b2, wi, wh, bias = params
    bs, seq, D = x.shape
    H = wh.shape[0]
    r = w2.shape[1]
    d_a = w1.shape[1]

    # Batch tiling: default one grid step covering the whole batch (best on the
    # single-TensorCore v5e/v6e: the recurrence stays seq steps long).  On v7x
    # pass batch_block = bs // 2 so the "parallel" grid axis uses both cores.
    bb = bs if batch_block is None else batch_block
    assert bs % bb == 0, "batch_block must divide batch size"
    nb = bs // bb

    kernel = functools.partial(_lstm_cell_attn_kernel, hidden_size=H, r_heads=r)

    grid_spec = pltpu.PrefetchScalarGridSpec(
        num_scalar_prefetch=0,
        grid=(nb,),
        in_specs=[
            pl.BlockSpec((bb, seq, D), lambda b: (b, 0, 0)),      # x
            pl.BlockSpec((D, d_a), lambda b: (0, 0)),             # w1
            pl.BlockSpec((1, d_a), lambda b: (0, 0)),             # b1
            pl.BlockSpec((d_a, r), lambda b: (0, 0)),             # w2
            pl.BlockSpec((1, r), lambda b: (0, 0)),               # b2
            pl.BlockSpec((D, 4 * H), lambda b: (0, 0)),           # weight_iBarh
            pl.BlockSpec((H, 4 * H), lambda b: (0, 0)),           # weight_hh
            pl.BlockSpec((1, 4 * H), lambda b: (0, 0)),           # bias
        ],
        out_specs=(
            pl.BlockSpec((bb, seq, H), lambda b: (b, 0, 0)),      # hidden_seq
            pl.BlockSpec((bb, 1, H), lambda b: (b, 0, 0)),        # h_T
            pl.BlockSpec((bb, 1, H), lambda b: (b, 0, 0)),        # c_T
            pl.BlockSpec((bb, r, seq), lambda b: (b, 0, 0)),      # attention
        ),
        scratch_shapes=[pltpu.VMEM((bb, seq, 4 * H), jnp.float32)],
    )

    out_shapes = (
        jax.ShapeDtypeStruct((bs, seq, H), jnp.float32),
        jax.ShapeDtypeStruct((bs, 1, H), jnp.float32),
        jax.ShapeDtypeStruct((bs, 1, H), jnp.float32),
        jax.ShapeDtypeStruct((bs, r, seq), jnp.float32),
    )

    hseq, h_T, c_T, attn = pl.pallas_call(
        kernel,
        out_shape=out_shapes,
        grid_spec=grid_spec,
        compiler_params=pltpu.CompilerParams(
            dimension_semantics=("parallel",)),
    )(x,
      w1, b1.reshape(1, -1),
      w2, b2.reshape(1, -1),
      wi, wh, bias.reshape(1, -1))

    return hseq, (h_T.reshape(bs, H), c_T.reshape(bs, H)), attn


def _reference(x, params):
    """Pure-JAX transcription of the PyTorch forward (for self-check)."""
    w1, b1, w2, b2, wi, wh, bias = params
    bs, seq, _ = x.shape
    H = wh.shape[0]
    r = w2.shape[1]
    h = jnp.zeros((bs, H), jnp.float32)
    c = jnp.zeros((bs, H), jnp.float32)
    hs = []
    attention = None
    for t in range(seq):
        Hpref = x[:, :t + 1, :]
        sc = jnp.tanh(Hpref @ w1 + b1) @ w2 + b2            # (bs, t+1, r)
        a = jax.nn.softmax(sc, axis=1)
        attention = jnp.swapaxes(a, 1, 2)                    # (bs, r, t+1)
        M = jnp.sum(attention @ Hpref, axis=1) / r           # (bs, D)
        gates = M @ wi + h @ wh + bias
        i_t = jax.nn.sigmoid(gates[:, :H])
        f_t = jax.nn.sigmoid(gates[:, H:2 * H])
        g_t = jnp.tanh(gates[:, 2 * H:3 * H])
        o_t = jax.nn.sigmoid(gates[:, 3 * H:])
        c = f_t * c + i_t * g_t
        h = o_t * jnp.tanh(c)
        hs.append(h)
    return jnp.stack(hs, axis=1), (h, c), attention


if __name__ == "__main__":
    bs, seq, input_sz, hidden_sz, r, d_a = 2, 8, 16, 32, 4, 8

    key = jax.random.PRNGKey(0)
    ks = jax.random.split(key, 5)

    def xavier(k, shape):
        bound = (6.0 / (shape[0] + shape[1])) ** 0.5
        return jax.random.uniform(k, shape, jnp.float32, -bound, bound)

    # deterministic synthetic parameters (xavier-uniform weights, zero biases,
    # matching the module's init_weights())
    w1 = xavier(ks[0], (input_sz, d_a))            # linear_first.weight^T
    b1 = jnp.zeros((d_a,), jnp.float32)
    w2 = xavier(ks[1], (d_a, r))                   # linear_second.weight^T
    b2 = jnp.zeros((r,), jnp.float32)
    wi = xavier(ks[2], (input_sz, 4 * hidden_sz))  # weight_iBarh
    wh = xavier(ks[3], (hidden_sz, 4 * hidden_sz)) # weight_hh
    bias = jnp.zeros((4 * hidden_sz,), jnp.float32)
    params = (w1, b1, w2, b2, wi, wh, bias)

    x = jax.random.normal(ks[4], (bs, seq, input_sz), jnp.float32)

    ref_seq, (ref_h, ref_c), ref_attn = _reference(x, params)

    # 1) default: whole batch in one grid step (single-TC v5e/v6e friendly)
    hidden_seq, (h_T, c_T), attention = lstm_with_input_cell_attention(x, params)
    jax.block_until_ready((hidden_seq, h_T, c_T, attention))
    assert jnp.allclose(hidden_seq, ref_seq, atol=2e-3, rtol=2e-3)
    assert jnp.allclose(h_T, ref_h, atol=2e-3, rtol=2e-3)
    assert jnp.allclose(c_T, ref_c, atol=2e-3, rtol=2e-3)
    assert jnp.allclose(attention, ref_attn, atol=2e-3, rtol=2e-3)

    # 2) batch split across the parallel grid axis (what you'd use on v7x to
    #    occupy both TensorCores); verifies the gridded path as well.
    hidden_seq2, (h_T2, c_T2), attention2 = lstm_with_input_cell_attention(
        x, params, batch_block=1)
    jax.block_until_ready((hidden_seq2, h_T2, c_T2, attention2))
    assert jnp.allclose(hidden_seq2, ref_seq, atol=2e-3, rtol=2e-3)
    assert jnp.allclose(h_T2, ref_h, atol=2e-3, rtol=2e-3)
    assert jnp.allclose(c_T2, ref_c, atol=2e-3, rtol=2e-3)
    assert jnp.allclose(attention2, ref_attn, atol=2e-3, rtol=2e-3)

    print("KERNEL_OK")
</pallas_src>

<mosaic_0001>
module attributes {stable_mosaic.version = 11 : i64} {
  func.func @_lstm_cell_attn_kernel(%arg0: i32, %arg1: memref<2x8x16xf32, #tpu.memory_space<vmem>>, %arg2: memref<16x8xf32, #tpu.memory_space<vmem>>, %arg3: memref<1x8xf32, #tpu.memory_space<vmem>>, %arg4: memref<8x4xf32, #tpu.memory_space<vmem>>, %arg5: memref<1x4xf32, #tpu.memory_space<vmem>>, %arg6: memref<16x128xf32, #tpu.memory_space<vmem>>, %arg7: memref<32x128xf32, #tpu.memory_space<vmem>>, %arg8: memref<1x128xf32, #tpu.memory_space<vmem>>, %arg9: memref<2x8x32xf32, #tpu.memory_space<vmem>>, %arg10: memref<2x1x32xf32, #tpu.memory_space<vmem>>, %arg11: memref<2x1x32xf32, #tpu.memory_space<vmem>>, %arg12: memref<2x4x8xf32, #tpu.memory_space<vmem>>, %arg13: memref<2x8x128xf32, #tpu.memory_space<vmem>>) attributes {dimension_semantics = [#tpu.dimension_semantics<parallel>], iteration_bounds = array<i64: 1>, scalar_prefetch = 0 : i64, scratch_operands = 1 : i64, tpu.core_type = #tpu.core_type<tc>, window_params = [{transform_indices = @transform_0, window_bounds = array<i64: 2, 8, 16>}, {pipeline_mode = #tpu.pipeline_mode<synchronous>, transform_indices = @transform_1, window_bounds = array<i64: 16, 8>}, {pipeline_mode = #tpu.pipeline_mode<synchronous>, transform_indices = @transform_2, window_bounds = array<i64: 1, 8>}, {pipeline_mode = #tpu.pipeline_mode<synchronous>, transform_indices = @transform_3, window_bounds = array<i64: 8, 4>}, {pipeline_mode = #tpu.pipeline_mode<synchronous>, transform_indices = @transform_4, window_bounds = array<i64: 1, 4>}, {pipeline_mode = #tpu.pipeline_mode<synchronous>, transform_indices = @transform_5, window_bounds = array<i64: 16, 128>}, {pipeline_mode = #tpu.pipeline_mode<synchronous>, transform_indices = @transform_6, window_bounds = array<i64: 32, 128>}, {pipeline_mode = #tpu.pipeline_mode<synchronous>, transform_indices = @transform_7, window_bounds = array<i64: 1, 128>}, {transform_indices = @transform_8, window_bounds = array<i64: 2, 8, 32>}, {transform_indices = @transform_9, window_bounds = array<i64: 2, 1, 32>}, {transform_indices = @transform_10, window_bounds = array<i64: 2, 1, 32>}, {transform_indices = @transform_11, window_bounds = array<i64: 2, 4, 8>}]} {
    %c0 = arith.constant 0 : index
    %c0_0 = arith.constant 0 : index
    %c0_1 = arith.constant 0 : index
    %0 = vector.load %arg1[%c0, %c0_0, %c0_1] : memref<2x8x16xf32, #tpu.memory_space<vmem>>, vector<2x8x16xf32>
    %c0_2 = arith.constant 0 : index
    %c0_3 = arith.constant 0 : index
    %1 = vector.load %arg2[%c0_2, %c0_3] : memref<16x8xf32, #tpu.memory_space<vmem>>, vector<16x8xf32>
    %c0_4 = arith.constant 0 : index
    %c0_5 = arith.constant 0 : index
    %2 = vector.load %arg3[%c0_4, %c0_5] : memref<1x8xf32, #tpu.memory_space<vmem>>, vector<1x8xf32>
    %c0_6 = arith.constant 0 : index
    %c0_7 = arith.constant 0 : index
    %3 = vector.load %arg4[%c0_6, %c0_7] : memref<8x4xf32, #tpu.memory_space<vmem>>, vector<8x4xf32>
    %c0_8 = arith.constant 0 : index
    %c0_9 = arith.constant 0 : index
    %4 = vector.load %arg5[%c0_8, %c0_9] : memref<1x4xf32, #tpu.memory_space<vmem>>, vector<1x4xf32>
    %c0_10 = arith.constant 0 : index
    %c0_11 = arith.constant 0 : index
    %5 = vector.load %arg6[%c0_10, %c0_11] : memref<16x128xf32, #tpu.memory_space<vmem>>, vector<16x128xf32>
    %c0_12 = arith.constant 0 : index
    %c0_13 = arith.constant 0 : index
    %6 = vector.load %arg7[%c0_12, %c0_13] : memref<32x128xf32, #tpu.memory_space<vmem>>, vector<32x128xf32>
    %c0_14 = arith.constant 0 : index
    %c0_15 = arith.constant 0 : index
    %7 = vector.load %arg8[%c0_14, %c0_15] : memref<1x128xf32, #tpu.memory_space<vmem>>, vector<1x128xf32>
    %8 = vector.shape_cast %0 : vector<2x8x16xf32> to vector<16x16xf32>
    %cst = arith.constant dense<0.000000e+00> : vector<16x8xf32>
    %9 = tpu.matmul %8, %1, %cst {dimension_numbers = #tpu.dot_dimension_numbers<[1], [0], [0], [1], [0, 0, 1, 1], [], []>} : vector<16x16xf32>, vector<16x8xf32>, vector<16x8xf32> -> vector<16x8xf32>
    %10 = vector.broadcast %2 : vector<1x8xf32> to vector<16x8xf32>
    %11 = arith.addf %9, %10 : vector<16x8xf32>
    %12 = math.tanh %11 : vector<16x8xf32>
    %cst_16 = arith.constant dense<0.000000e+00> : vector<16x4xf32>
    %13 = tpu.matmul %12, %3, %cst_16 {dimension_numbers = #tpu.dot_dimension_numbers<[1], [0], [0], [1], [0, 0, 1, 1], [], []>} : vector<16x8xf32>, vector<8x4xf32>, vector<16x4xf32> -> vector<16x4xf32>
    %14 = vector.broadcast %4 : vector<1x4xf32> to vector<16x4xf32>
    %15 = arith.addf %13, %14 : vector<16x4xf32>
    %16 = vector.shape_cast %15 : vector<16x4xf32> to vector<2x8x4xf32>
    %17 = tpu.transpose %16, [0, 2, 1] : vector<2x8x4xf32> -> vector<2x4x8xf32>
    %18 = tpu.iota {dimensions = array<i32: 0>} : vector<8x8xi32>
    %19 = tpu.iota {dimensions = array<i32: 1>} : vector<8x8xi32>
    %20 = arith.cmpi sle, %19, %18 : vector<8x8xi32>
    %21 = vector.shape_cast %20 : vector<8x8xi1> to vector<1x1x8x8xi1>
    %22 = vector.shape_cast %17 : vector<2x4x8xf32> to vector<2x4x1x8xf32>
    %cst_17 = arith.constant -1.000000e+30 : f32
    %23 = vector.shape_cast %21 : vector<1x1x8x8xi1> to vector<1x1x8x8xi1>
    %24 = vector.broadcast %23 : vector<1x1x8x8xi1> to vector<2x4x8x8xi1>
    %25 = vector.shape_cast %22 : vector<2x4x1x8xf32> to vector<2x4x1x8xf32>
    %26 = vector.broadcast %25 : vector<2x4x1x8xf32> to vector<2x4x8x8xf32>
    %27 = vector.broadcast %cst_17 : f32 to vector<2x4x8x8xf32>
    %28 = arith.select %24, %26, %27 : vector<2x4x8x8xi1>, vector<2x4x8x8xf32>
    %cst_18 = arith.constant dense<0xFF800000> : vector<2x4x8xf32>
    %29 = vector.multi_reduction <maximumf>, %28, %cst_18 [3] : vector<2x4x8x8xf32> to vector<2x4x8xf32>
    %30 = vector.shape_cast %29 : vector<2x4x8xf32> to vector<2x4x8x1xf32>
    %31 = vector.broadcast %30 : vector<2x4x8x1xf32> to vector<2x4x8x8xf32>
    %32 = arith.subf %28, %31 : vector<2x4x8x8xf32>
    %33 = math.exp %32 : vector<2x4x8x8xf32>
    %cst_19 = arith.constant dense<0.000000e+00> : vector<2x4x8xf32>
    %34 = vector.multi_reduction <add>, %33, %cst_19 [3] : vector<2x4x8x8xf32> to vector<2x4x8xf32>
    %35 = vector.shape_cast %34 : vector<2x4x8xf32> to vector<2x4x8x1xf32>
    %36 = tpu.reciprocal %35 {approx = true} : vector<2x4x8x1xf32> -> vector<2x4x8x1xf32>
    %37 = vector.broadcast %36 : vector<2x4x8x1xf32> to vector<2x4x8x8xf32>
    %38 = arith.mulf %33, %37 : vector<2x4x8x8xf32>
    %39 = vector.extract_strided_slice %38 {offsets = [0, 0, 7, 0], sizes = [2, 4, 1, 8], strides = [1, 1, 1, 1]} : vector<2x4x8x8xf32> to vector<2x4x1x8xf32>
    %40 = vector.shape_cast %39 : vector<2x4x1x8xf32> to vector<2x4x8xf32>
    %c0_20 = arith.constant 0 : index
    %c0_21 = arith.constant 0 : index
    %c0_22 = arith.constant 0 : index
    %41 = vector.load %arg12[%c0_20, %c0_21, %c0_22] : memref<2x4x8xf32, #tpu.memory_space<vmem>>, vector<2x4x8xf32>
    tpu.vector_store %arg12[%c0_20, %c0_21, %c0_22], %40 {strides = array<i32>} : memref<2x4x8xf32, #tpu.memory_space<vmem>>, vector<2x4x8xf32>,
    %cst_23 = arith.constant dense<0.000000e+00> : vector<2x8x8xf32>
    %42 = vector.multi_reduction <add>, %38, %cst_23 [1] : vector<2x4x8x8xf32> to vector<2x8x8xf32>
    %cst_24 = arith.constant 2.500000e-01 : f32
    %43 = vector.broadcast %cst_24 : f32 to vector<2x8x8xf32>
    %44 = arith.mulf %42, %43 : vector<2x8x8xf32>
    "tpu.trace_start"() <{level = 10 : i32, message = "bts,bsd->btd"}> : () -> ()
    %cst_25 = arith.constant dense<0.000000e+00> : vector<2x8x16xf32>
    %45 = tpu.matmul %44, %0, %cst_25 {dimension_numbers = #tpu.dot_dimension_numbers<[2], [1], [1], [2], [0, 0, 0, 1, 1, 2], [0], [0]>} : vector<2x8x8xf32>, vector<2x8x16xf32>, vector<2x8x16xf32> -> vector<2x8x16xf32>
    "tpu.trace_stop"() : () -> ()
    %46 = vector.shape_cast %45 : vector<2x8x16xf32> to vector<16x16xf32>
    %cst_26 = arith.constant dense<0.000000e+00> : vector<16x128xf32>
    %47 = tpu.matmul %46, %5, %cst_26 {dimension_numbers = #tpu.dot_dimension_numbers<[1], [0], [0], [1], [0, 0, 1, 1], [], []>} : vector<16x16xf32>, vector<16x128xf32>, vector<16x128xf32> -> vector<16x128xf32>
    %48 = vector.broadcast %7 : vector<1x128xf32> to vector<16x128xf32>
    %49 = arith.addf %47, %48 : vector<16x128xf32>
    %50 = vector.shape_cast %49 : vector<16x128xf32> to vector<2x8x128xf32>
    %c0_27 = arith.constant 0 : index
    %c0_28 = arith.constant 0 : index
    %c0_29 = arith.constant 0 : index
    %51 = vector.load %arg13[%c0_27, %c0_28, %c0_29] : memref<2x8x128xf32, #tpu.memory_space<vmem>>, vector<2x8x128xf32>
    tpu.vector_store %arg13[%c0_27, %c0_28, %c0_29], %50 {strides = array<i32>} : memref<2x8x128xf32, #tpu.memory_space<vmem>>, vector<2x8x128xf32>,
    %cst_30 = arith.constant 0.000000e+00 : f32
    %52 = vector.broadcast %cst_30 : f32 to vector<2x32xf32>
    %cst_31 = arith.constant 0.000000e+00 : f32
    %53 = vector.broadcast %cst_31 : f32 to vector<2x32xf32>
    %c0_i32 = arith.constant 0 : i32
    %c0_32 = arith.constant 0 : index
    %54 = arith.index_cast %c0_i32 : i32 to index
    %c0_33 = arith.constant 0 : index
    %55 = vector.load %arg13[%c0_32, %54, %c0_33] : memref<2x8x128xf32, #tpu.memory_space<vmem>>, vector<2x1x128xf32>
    %56 = vector.shape_cast %55 : vector<2x1x128xf32> to vector<2x128xf32>
    %cst_34 = arith.constant dense<0.000000e+00> : vector<2x128xf32>
    %57 = tpu.matmul %52, %6, %cst_34 {dimension_numbers = #tpu.dot_dimension_numbers<[1], [0], [0], [1], [0, 0, 1, 1], [], []>} : vector<2x32xf32>, vector<32x128xf32>, vector<2x128xf32> -> vector<2x128xf32>
    %58 = arith.addf %56, %57 : vector<2x128xf32>
    %59 = vector.extract_strided_slice %58 {offsets = [0, 0], sizes = [2, 32], strides = [1, 1]} : vector<2x128xf32> to vector<2x32xf32>
    %60 = arith.negf %59 : vector<2x32xf32>
    %61 = math.exp %60 : vector<2x32xf32>
    %cst_35 = arith.constant 1.000000e+00 : f32
    %62 = vector.broadcast %cst_35 : f32 to vector<2x32xf32>
    %63 = arith.addf %62, %61 : vector<2x32xf32>
    %64 = arith.divf %62, %63 : vector<2x32xf32>
    %65 = vector.extract_strided_slice %58 {offsets = [0, 32], sizes = [2, 32], strides = [1, 1]} : vector<2x128xf32> to vector<2x32xf32>
    %66 = arith.negf %65 : vector<2x32xf32>
    %67 = math.exp %66 : vector<2x32xf32>
    %cst_36 = arith.constant 1.000000e+00 : f32
    %68 = vector.broadcast %cst_36 : f32 to vector<2x32xf32>
    %69 = arith.addf %68, %67 : vector<2x32xf32>
    %70 = arith.divf %68, %69 : vector<2x32xf32>
    %71 = vector.extract_strided_slice %58 {offsets = [0, 64], sizes = [2, 32], strides = [1, 1]} : vector<2x128xf32> to vector<2x32xf32>
    %72 = math.tanh %71 : vector<2x32xf32>
    %73 = vector.extract_strided_slice %58 {offsets = [0, 96], sizes = [2, 32], strides = [1, 1]} : vector<2x128xf32> to vector<2x32xf32>
    %74 = arith.negf %73 : vector<2x32xf32>
    %75 = math.exp %74 : vector<2x32xf32>
    %cst_37 = arith.constant 1.000000e+00 : f32
    %76 = vector.broadcast %cst_37 : f32 to vector<2x32xf32>
    %77 = arith.addf %76, %75 : vector<2x32xf32>
    %78 = arith.divf %76, %77 : vector<2x32xf32>
    %79 = arith.mulf %70, %53 : vector<2x32xf32>
    %80 = arith.mulf %64, %72 : vector<2x32xf32>
    %81 = arith.addf %79, %80 : vector<2x32xf32>
    %82 = math.tanh %81 : vector<2x32xf32>
    %83 = arith.mulf %78, %82 : vector<2x32xf32>
    %84 = vector.shape_cast %83 : vector<2x32xf32> to vector<2x1x32xf32>
    %c0_38 = arith.constant 0 : index
    %85 = arith.index_cast %c0_i32 : i32 to index
    %c0_39 = arith.constant 0 : index
    %86 = vector.load %arg9[%c0_38, %85, %c0_39] : memref<2x8x32xf32, #tpu.memory_space<vmem>>, vector<2x1x32xf32>
    tpu.vector_store %arg9[%c0_38, %85, %c0_39], %84 {strides = array<i32>} : memref<2x8x32xf32, #tpu.memory_space<vmem>>, vector<2x1x32xf32>,
    %c1_i32 = arith.constant 1 : i32
    %c0_40 = arith.constant 0 : index
    %87 = arith.index_cast %c1_i32 : i32 to index
    %c0_41 = arith.constant 0 : index
    %88 = vector.load %arg13[%c0_40, %87, %c0_41] : memref<2x8x128xf32, #tpu.memory_space<vmem>>, vector<2x1x128xf32>
    %89 = vector.shape_cast %88 : vector<2x1x128xf32> to vector<2x128xf32>
    %cst_42 = arith.constant dense<0.000000e+00> : vector<2x128xf32>
    %90 = tpu.matmul %83, %6, %cst_42 {dimension_numbers = #tpu.dot_dimension_numbers<[1], [0], [0], [1], [0, 0, 1, 1], [], []>} : vector<2x32xf32>, vector<32x128xf32>, vector<2x128xf32> -> vector<2x128xf32>
    %91 = arith.addf %89, %90 : vector<2x128xf32>
    %92 = vector.extract_strided_slice %91 {offsets = [0, 0], sizes = [2, 32], strides = [1, 1]} : vector<2x128xf32> to vector<2x32xf32>
    %93 = arith.negf %92 : vector<2x32xf32>
    %94 = math.exp %93 : vector<2x32xf32>
    %cst_43 = arith.constant 1.000000e+00 : f32
    %95 = vector.broadcast %cst_43 : f32 to vector<2x32xf32>
    %96 = arith.addf %95, %94 : vector<2x32xf32>
    %97 = arith.divf %95, %96 : vector<2x32xf32>
    %98 = vector.extract_strided_slice %91 {offsets = [0, 32], sizes = [2, 32], strides = [1, 1]} : vector<2x128xf32> to vector<2x32xf32>
    %99 = arith.negf %98 : vector<2x32xf32>
    %100 = math.exp %99 : vector<2x32xf32>
    %cst_44 = arith.constant 1.000000e+00 : f32
    %101 = vector.broadcast %cst_44 : f32 to vector<2x32xf32>
    %102 = arith.addf %101, %100 : vector<2x32xf32>
    %103 = arith.divf %101, %102 : vector<2x32xf32>
    %104 = vector.extract_strided_slice %91 {offsets = [0, 64], sizes = [2, 32], strides = [1, 1]} : vector<2x128xf32> to vector<2x32xf32>
    %105 = math.tanh %104 : vector<2x32xf32>
    %106 = vector.extract_strided_slice %91 {offsets = [0, 96], sizes = [2, 32], strides = [1, 1]} : vector<2x128xf32> to vector<2x32xf32>
    %107 = arith.negf %106 : vector<2x32xf32>
    %108 = math.exp %107 : vector<2x32xf32>
    %cst_45 = arith.constant 1.000000e+00 : f32
    %109 = vector.broadcast %cst_45 : f32 to vector<2x32xf32>
    %110 = arith.addf %109, %108 : vector<2x32xf32>
    %111 = arith.divf %109, %110 : vector<2x32xf32>
    %112 = arith.mulf %103, %81 : vector<2x32xf32>
    %113 = arith.mulf %97, %105 : vector<2x32xf32>
    %114 = arith.addf %112, %113 : vector<2x32xf32>
    %115 = math.tanh %114 : vector<2x32xf32>
    %116 = arith.mulf %111, %115 : vector<2x32xf32>
    %117 = vector.shape_cast %116 : vector<2x32xf32> to vector<2x1x32xf32>
    %c0_46 = arith.constant 0 : index
    %118 = arith.index_cast %c1_i32 : i32 to index
    %c0_47 = arith.constant 0 : index
    %119 = vector.load %arg9[%c0_46, %118, %c0_47] : memref<2x8x32xf32, #tpu.memory_space<vmem>>, vector<2x1x32xf32>
    tpu.vector_store %arg9[%c0_46, %118, %c0_47], %117 {strides = array<i32>} : memref<2x8x32xf32, #tpu.memory_space<vmem>>, vector<2x1x32xf32>,
    %c2_i32 = arith.constant 2 : i32
    %c0_48 = arith.constant 0 : index
    %120 = arith.index_cast %c2_i32 : i32 to index
    %c0_49 = arith.constant 0 : index
    %121 = vector.load %arg13[%c0_48, %120, %c0_49] : memref<2x8x128xf32, #tpu.memory_space<vmem>>, vector<2x1x128xf32>
    %122 = vector.shape_cast %121 : vector<2x1x128xf32> to vector<2x128xf32>
    %cst_50 = arith.constant dense<0.000000e+00> : vector<2x128xf32>
    %123 = tpu.matmul %116, %6, %cst_50 {dimension_numbers = #tpu.dot_dimension_numbers<[1], [0], [0], [1], [0, 0, 1, 1], [], []>} : vector<2x32xf32>, vector<32x128xf32>, vector<2x128xf32> -> vector<2x128xf32>
    %124 = arith.addf %122, %123 : vector<2x128xf32>
    %125 = vector.extract_strided_slice %124 {offsets = [0, 0], sizes = [2, 32], strides = [1, 1]} : vector<2x128xf32> to vector<2x32xf32>
    %126 = arith.negf %125 : vector<2x32xf32>
    %127 = math.exp %126 : vector<2x32xf32>
    %cst_51 = arith.constant 1.000000e+00 : f32
    %128 = vector.broadcast %cst_51 : f32 to vector<2x32xf32>
    %129 = arith.addf %128, %127 : vector<2x32xf32>
    %130 = arith.divf %128, %129 : vector<2x32xf32>
    %131 = vector.extract_strided_slice %124 {offsets = [0, 32], sizes = [2, 32], strides = [1, 1]} : vector<2x128xf32> to vector<2x32xf32>
    %132 = arith.negf %131 : vector<2x32xf32>
    %133 = math.exp %132 : vector<2x32xf32>
    %cst_52 = arith.constant 1.000000e+00 : f32
    %134 = vector.broadcast %cst_52 : f32 to vector<2x32xf32>
    %135 = arith.addf %134, %133 : vector<2x32xf32>
    %136 = arith.divf %134, %135 : vector<2x32xf32>
    %137 = vector.extract_strided_slice %124 {offsets = [0, 64], sizes = [2, 32], strides = [1, 1]} : vector<2x128xf32> to vector<2x32xf32>
    %138 = math.tanh %137 : vector<2x32xf32>
    %139 = vector.extract_strided_slice %124 {offsets = [0, 96], sizes = [2, 32], strides = [1, 1]} : vector<2x128xf32> to vector<2x32xf32>
    %140 = arith.negf %139 : vector<2x32xf32>
    %141 = math.exp %140 : vector<2x32xf32>
    %cst_53 = arith.constant 1.000000e+00 : f32
    %142 = vector.broadcast %cst_53 : f32 to vector<2x32xf32>
    %143 = arith.addf %142, %141 : vector<2x32xf32>
    %144 = arith.divf %142, %143 : vector<2x32xf32>
    %145 = arith.mulf %136, %114 : vector<2x32xf32>
    %146 = arith.mulf %130, %138 : vector<2x32xf32>
    %147 = arith.addf %145, %146 : vector<2x32xf32>
    %148 = math.tanh %147 : vector<2x32xf32>
    %149 = arith.mulf %144, %148 : vector<2x32xf32>
    %150 = vector.shape_cast %149 : vector<2x32xf32> to vector<2x1x32xf32>
    %c0_54 = arith.constant 0 : index
    %151 = arith.index_cast %c2_i32 : i32 to index
    %c0_55 = arith.constant 0 : index
    %152 = vector.load %arg9[%c0_54, %151, %c0_55] : memref<2x8x32xf32, #tpu.memory_space<vmem>>, vector<2x1x32xf32>
    tpu.vector_store %arg9[%c0_54, %151, %c0_55], %150 {strides = array<i32>} : memref<2x8x32xf32, #tpu.memory_space<vmem>>, vector<2x1x32xf32>,
    %c3_i32 = arith.constant 3 : i32
    %c0_56 = arith.constant 0 : index
    %153 = arith.index_cast %c3_i32 : i32 to index
    %c0_57 = arith.constant 0 : index
    %154 = vector.load %arg13[%c0_56, %153, %c0_57] : memref<2x8x128xf32, #tpu.memory_space<vmem>>, vector<2x1x128xf32>
    %155 = vector.shape_cast %154 : vector<2x1x128xf32> to vector<2x128xf32>
    %cst_58 = arith.constant dense<0.000000e+00> : vector<2x128xf32>
    %156 = tpu.matmul %149, %6, %cst_58 {dimension_numbers = #tpu.dot_dimension_numbers<[1], [0], [0], [1], [0, 0, 1, 1], [], []>} : vector<2x32xf32>, vector<32x128xf32>, vector<2x128xf32> -> vector<2x128xf32>
    %157 = arith.addf %155, %156 : vector<2x128xf32>
    %158 = vector.extract_strided_slice %157 {offsets = [0, 0], sizes = [2, 32], strides = [1, 1]} : vector<2x128xf32> to vector<2x32xf32>
    %159 = arith.negf %158 : vector<2x32xf32>
    %160 = math.exp %159 : vector<2x32xf32>
    %cst_59 = arith.constant 1.000000e+00 : f32
    %161 = vector.broadcast %cst_59 : f32 to vector<2x32xf32>
    %162 = arith.addf %161, %160 : vector<2x32xf32>
    %163 = arith.divf %161, %162 : vector<2x32xf32>
    %164 = vector.extract_strided_slice %157 {offsets = [0, 32], sizes = [2, 32], strides = [1, 1]} : vector<2x128xf32> to vector<2x32xf32>
    %165 = arith.negf %164 : vector<2x32xf32>
    %166 = math.exp %165 : vector<2x32xf32>
    %cst_60 = arith.constant 1.000000e+00 : f32
    %167 = vector.broadcast %cst_60 : f32 to vector<2x32xf32>
    %168 = arith.addf %167, %166 : vector<2x32xf32>
    %169 = arith.divf %167, %168 : vector<2x32xf32>
    %170 = vector.extract_strided_slice %157 {offsets = [0, 64], sizes = [2, 32], strides = [1, 1]} : vector<2x128xf32> to vector<2x32xf32>
    %171 = math.tanh %170 : vector<2x32xf32>
    %172 = vector.extract_strided_slice %157 {offsets = [0, 96], sizes = [2, 32], strides = [1, 1]} : vector<2x128xf32> to vector<2x32xf32>
    %173 = arith.negf %172 : vector<2x32xf32>
    %174 = math.exp %173 : vector<2x32xf32>
    %cst_61 = arith.constant 1.000000e+00 : f32
    %175 = vector.broadcast %cst_61 : f32 to vector<2x32xf32>
    %176 = arith.addf %175, %174 : vector<2x32xf32>
    %177 = arith.divf %175, %176 : vector<2x32xf32>
    %178 = arith.mulf %169, %147 : vector<2x32xf32>
    %179 = arith.mulf %163, %171 : vector<2x32xf32>
    %180 = arith.addf %178, %179 : vector<2x32xf32>
    %181 = math.tanh %180 : vector<2x32xf32>
    %182 = arith.mulf %177, %181 : vector<2x32xf32>
    %183 = vector.shape_cast %182 : vector<2x32xf32> to vector<2x1x32xf32>
    %c0_62 = arith.constant 0 : index
    %184 = arith.index_cast %c3_i32 : i32 to index
    %c0_63 = arith.constant 0 : index
    %185 = vector.load %arg9[%c0_62, %184, %c0_63] : memref<2x8x32xf32, #tpu.memory_space<vmem>>, vector<2x1x32xf32>
    tpu.vector_store %arg9[%c0_62, %184, %c0_63], %183 {strides = array<i32>} : memref<2x8x32xf32, #tpu.memory_space<vmem>>, vector<2x1x32xf32>,
    %c4_i32 = arith.constant 4 : i32
    %c0_64 = arith.constant 0 : index
    %186 = arith.index_cast %c4_i32 : i32 to index
    %c0_65 = arith.constant 0 : index
    %187 = vector.load %arg13[%c0_64, %186, %c0_65] : memref<2x8x128xf32, #tpu.memory_space<vmem>>, vector<2x1x128xf32>
    %188 = vector.shape_cast %187 : vector<2x1x128xf32> to vector<2x128xf32>
    %cst_66 = arith.constant dense<0.000000e+00> : vector<2x128xf32>
    %189 = tpu.matmul %182, %6, %cst_66 {dimension_numbers = #tpu.dot_dimension_numbers<[1], [0], [0], [1], [0, 0, 1, 1], [], []>} : vector<2x32xf32>, vector<32x128xf32>, vector<2x128xf32> -> vector<2x128xf32>
    %190 = arith.addf %188, %189 : vector<2x128xf32>
    %191 = vector.extract_strided_slice %190 {offsets = [0, 0], sizes = [2, 32], strides = [1, 1]} : vector<2x128xf32> to vector<2x32xf32>
    %192 = arith.negf %191 : vector<2x32xf32>
    %193 = math.exp %192 : vector<2x32xf32>
    %cst_67 = arith.constant 1.000000e+00 : f32
    %194 = vector.broadcast %cst_67 : f32 to vector<2x32xf32>
    %195 = arith.addf %194, %193 : vector<2x32xf32>
    %196 = arith.divf %194, %195 : vector<2x32xf32>
    %197 = vector.extract_strided_slice %190 {offsets = [0, 32], sizes = [2, 32], strides = [1, 1]} : vector<2x128xf32> to vector<2x32xf32>
    %198 = arith.negf %197 : vector<2x32xf32>
    %199 = math.exp %198 : vector<2x32xf32>
    %cst_68 = arith.constant 1.000000e+00 : f32
    %200 = vector.broadcast %cst_68 : f32 to vector<2x32xf32>
    %201 = arith.addf %200, %199 : vector<2x32xf32>
    %202 = arith.divf %200, %201 : vector<2x32xf32>
    %203 = vector.extract_strided_slice %190 {offsets = [0, 64], sizes = [2, 32], strides = [1, 1]} : vector<2x128xf32> to vector<2x32xf32>
    %204 = math.tanh %203 : vector<2x32xf32>
    %205 = vector.extract_strided_slice %190 {offsets = [0, 96], sizes = [2, 32], strides = [1, 1]} : vector<2x128xf32> to vector<2x32xf32>
    %206 = arith.negf %205 : vector<2x32xf32>
    %207 = math.exp %206 : vector<2x32xf32>
    %cst_69 = arith.constant 1.000000e+00 : f32
    %208 = vector.broadcast %cst_69 : f32 to vector<2x32xf32>
    %209 = arith.addf %208, %207 : vector<2x32xf32>
    %210 = arith.divf %208, %209 : vector<2x32xf32>
    %211 = arith.mulf %202, %180 : vector<2x32xf32>
    %212 = arith.mulf %196, %204 : vector<2x32xf32>
    %213 = arith.addf %211, %212 : vector<2x32xf32>
    %214 = math.tanh %213 : vector<2x32xf32>
    %215 = arith.mulf %210, %214 : vector<2x32xf32>
    %216 = vector.shape_cast %215 : vector<2x32xf32> to vector<2x1x32xf32>
    %c0_70 = arith.constant 0 : index
    %217 = arith.index_cast %c4_i32 : i32 to index
    %c0_71 = arith.constant 0 : index
    %218 = vector.load %arg9[%c0_70, %217, %c0_71] : memref<2x8x32xf32, #tpu.memory_space<vmem>>, vector<2x1x32xf32>
    tpu.vector_store %arg9[%c0_70, %217, %c0_71], %216 {strides = array<i32>} : memref<2x8x32xf32, #tpu.memory_space<vmem>>, vector<2x1x32xf32>,
    %c5_i32 = arith.constant 5 : i32
    %c0_72 = arith.constant 0 : index
    %219 = arith.index_cast %c5_i32 : i32 to index
    %c0_73 = arith.constant 0 : index
    %220 = vector.load %arg13[%c0_72, %219, %c0_73] : memref<2x8x128xf32, #tpu.memory_space<vmem>>, vector<2x1x128xf32>
    %221 = vector.shape_cast %220 : vector<2x1x128xf32> to vector<2x128xf32>
    %cst_74 = arith.constant dense<0.000000e+00> : vector<2x128xf32>
    %222 = tpu.matmul %215, %6, %cst_74 {dimension_numbers = #tpu.dot_dimension_numbers<[1], [0], [0], [1], [0, 0, 1, 1], [], []>} : vector<2x32xf32>, vector<32x128xf32>, vector<2x128xf32> -> vector<2x128xf32>
    %223 = arith.addf %221, %222 : vector<2x128xf32>
    %224 = vector.extract_strided_slice %223 {offsets = [0, 0], sizes = [2, 32], strides = [1, 1]} : vector<2x128xf32> to vector<2x32xf32>
    %225 = arith.negf %224 : vector<2x32xf32>
    %226 = math.exp %225 : vector<2x32xf32>
    %cst_75 = arith.constant 1.000000e+00 : f32
    %227 = vector.broadcast %cst_75 : f32 to vector<2x32xf32>
    %228 = arith.addf %227, %226 : vector<2x32xf32>
    %229 = arith.divf %227, %228 : vector<2x32xf32>
    %230 = vector.extract_strided_slice %223 {offsets = [0, 32], sizes = [2, 32], strides = [1, 1]} : vector<2x128xf32> to vector<2x32xf32>
    %231 = arith.negf %230 : vector<2x32xf32>
    %232 = math.exp %231 : vector<2x32xf32>
    %cst_76 = arith.constant 1.000000e+00 : f32
    %233 = vector.broadcast %cst_76 : f32 to vector<2x32xf32>
    %234 = arith.addf %233, %232 : vector<2x32xf32>
    %235 = arith.divf %233, %234 : vector<2x32xf32>
    %236 = vector.extract_strided_slice %223 {offsets = [0, 64], sizes = [2, 32], strides = [1, 1]} : vector<2x128xf32> to vector<2x32xf32>
    %237 = math.tanh %236 : vector<2x32xf32>
    %238 = vector.extract_strided_slice %223 {offsets = [0, 96], sizes = [2, 32], strides = [1, 1]} : vector<2x128xf32> to vector<2x32xf32>
    %239 = arith.negf %238 : vector<2x32xf32>
    %240 = math.exp %239 : vector<2x32xf32>
    %cst_77 = arith.constant 1.000000e+00 : f32
    %241 = vector.broadcast %cst_77 : f32 to vector<2x32xf32>
    %242 = arith.addf %241, %240 : vector<2x32xf32>
    %243 = arith.divf %241, %242 : vector<2x32xf32>
    %244 = arith.mulf %235, %213 : vector<2x32xf32>
    %245 = arith.mulf %229, %237 : vector<2x32xf32>
    %246 = arith.addf %244, %245 : vector<2x32xf32>
    %247 = math.tanh %246 : vector<2x32xf32>
    %248 = arith.mulf %243, %247 : vector<2x32xf32>
    %249 = vector.shape_cast %248 : vector<2x32xf32> to vector<2x1x32xf32>
    %c0_78 = arith.constant 0 : index
    %250 = arith.index_cast %c5_i32 : i32 to index
    %c0_79 = arith.constant 0 : index
    %251 = vector.load %arg9[%c0_78, %250, %c0_79] : memref<2x8x32xf32, #tpu.memory_space<vmem>>, vector<2x1x32xf32>
    tpu.vector_store %arg9[%c0_78, %250, %c0_79], %249 {strides = array<i32>} : memref<2x8x32xf32, #tpu.memory_space<vmem>>, vector<2x1x32xf32>,
    %c6_i32 = arith.constant 6 : i32
    %c0_80 = arith.constant 0 : index
    %252 = arith.index_cast %c6_i32 : i32 to index
    %c0_81 = arith.constant 0 : index
    %253 = vector.load %arg13[%c0_80, %252, %c0_81] : memref<2x8x128xf32, #tpu.memory_space<vmem>>, vector<2x1x128xf32>
    %254 = vector.shape_cast %253 : vector<2x1x128xf32> to vector<2x128xf32>
    %cst_82 = arith.constant dense<0.000000e+00> : vector<2x128xf32>
    %255 = tpu.matmul %248, %6, %cst_82 {dimension_numbers = #tpu.dot_dimension_numbers<[1], [0], [0], [1], [0, 0, 1, 1], [], []>} : vector<2x32xf32>, vector<32x128xf32>, vector<2x128xf32> -> vector<2x128xf32>
    %256 = arith.addf %254, %255 : vector<2x128xf32>
    %257 = vector.extract_strided_slice %256 {offsets = [0, 0], sizes = [2, 32], strides = [1, 1]} : vector<2x128xf32> to vector<2x32xf32>
    %258 = arith.negf %257 : vector<2x32xf32>
    %259 = math.exp %258 : vector<2x32xf32>
    %cst_83 = arith.constant 1.000000e+00 : f32
    %260 = vector.broadcast %cst_83 : f32 to vector<2x32xf32>
    %261 = arith.addf %260, %259 : vector<2x32xf32>
    %262 = arith.divf %260, %261 : vector<2x32xf32>
    %263 = vector.extract_strided_slice %256 {offsets = [0, 32], sizes = [2, 32], strides = [1, 1]} : vector<2x128xf32> to vector<2x32xf32>
    %264 = arith.negf %263 : vector<2x32xf32>
    %265 = math.exp %264 : vector<2x32xf32>
    %cst_84 = arith.constant 1.000000e+00 : f32
    %266 = vector.broadcast %cst_84 : f32 to vector<2x32xf32>
    %267 = arith.addf %266, %265 : vector<2x32xf32>
    %268 = arith.divf %266, %267 : vector<2x32xf32>
    %269 = vector.extract_strided_slice %256 {offsets = [0, 64], sizes = [2, 32], strides = [1, 1]} : vector<2x128xf32> to vector<2x32xf32>
    %270 = math.tanh %269 : vector<2x32xf32>
    %271 = vector.extract_strided_slice %256 {offsets = [0, 96], sizes = [2, 32], strides = [1, 1]} : vector<2x128xf32> to vector<2x32xf32>
    %272 = arith.negf %271 : vector<2x32xf32>
    %273 = math.exp %272 : vector<2x32xf32>
    %cst_85 = arith.constant 1.000000e+00 : f32
    %274 = vector.broadcast %cst_85 : f32 to vector<2x32xf32>
    %275 = arith.addf %274, %273 : vector<2x32xf32>
    %276 = arith.divf %274, %275 : vector<2x32xf32>
    %277 = arith.mulf %268, %246 : vector<2x32xf32>
    %278 = arith.mulf %262, %270 : vector<2x32xf32>
    %279 = arith.addf %277, %278 : vector<2x32xf32>
    %280 = math.tanh %279 : vector<2x32xf32>
    %281 = arith.mulf %276, %280 : vector<2x32xf32>
    %282 = vector.shape_cast %281 : vector<2x32xf32> to vector<2x1x32xf32>
    %c0_86 = arith.constant 0 : index
    %283 = arith.index_cast %c6_i32 : i32 to index
    %c0_87 = arith.constant 0 : index
    %284 = vector.load %arg9[%c0_86, %283, %c0_87] : memref<2x8x32xf32, #tpu.memory_space<vmem>>, vector<2x1x32xf32>
    tpu.vector_store %arg9[%c0_86, %283, %c0_87], %282 {strides = array<i32>} : memref<2x8x32xf32, #tpu.memory_space<vmem>>, vector<2x1x32xf32>,
    %c7_i32 = arith.constant 7 : i32
    %c0_88 = arith.constant 0 : index
    %285 = arith.index_cast %c7_i32 : i32 to index
    %c0_89 = arith.constant 0 : index
    %286 = vector.load %arg13[%c0_88, %285, %c0_89] : memref<2x8x128xf32, #tpu.memory_space<vmem>>, vector<2x1x128xf32>
    %287 = vector.shape_cast %286 : vector<2x1x128xf32> to vector<2x128xf32>
    %cst_90 = arith.constant dense<0.000000e+00> : vector<2x128xf32>
    %288 = tpu.matmul %281, %6, %cst_90 {dimension_numbers = #tpu.dot_dimension_numbers<[1], [0], [0], [1], [0, 0, 1, 1], [], []>} : vector<2x32xf32>, vector<32x128xf32>, vector<2x128xf32> -> vector<2x128xf32>
    %289 = arith.addf %287, %288 : vector<2x128xf32>
    %290 = vector.extract_strided_slice %289 {offsets = [0, 0], sizes = [2, 32], strides = [1, 1]} : vector<2x128xf32> to vector<2x32xf32>
    %291 = arith.negf %290 : vector<2x32xf32>
    %292 = math.exp %291 : vector<2x32xf32>
    %cst_91 = arith.constant 1.000000e+00 : f32
    %293 = vector.broadcast %cst_91 : f32 to vector<2x32xf32>
    %294 = arith.addf %293, %292 : vector<2x32xf32>
    %295 = arith.divf %293, %294 : vector<2x32xf32>
    %296 = vector.extract_strided_slice %289 {offsets = [0, 32], sizes = [2, 32], strides = [1, 1]} : vector<2x128xf32> to vector<2x32xf32>
    %297 = arith.negf %296 : vector<2x32xf32>
    %298 = math.exp %297 : vector<2x32xf32>
    %cst_92 = arith.constant 1.000000e+00 : f32
    %299 = vector.broadcast %cst_92 : f32 to vector<2x32xf32>
    %300 = arith.addf %299, %298 : vector<2x32xf32>
    %301 = arith.divf %299, %300 : vector<2x32xf32>
    %302 = vector.extract_strided_slice %289 {offsets = [0, 64], sizes = [2, 32], strides = [1, 1]} : vector<2x128xf32> to vector<2x32xf32>
    %303 = math.tanh %302 : vector<2x32xf32>
    %304 = vector.extract_strided_slice %289 {offsets = [0, 96], sizes = [2, 32], strides = [1, 1]} : vector<2x128xf32> to vector<2x32xf32>
    %305 = arith.negf %304 : vector<2x32xf32>
    %306 = math.exp %305 : vector<2x32xf32>
    %cst_93 = arith.constant 1.000000e+00 : f32
    %307 = vector.broadcast %cst_93 : f32 to vector<2x32xf32>
    %308 = arith.addf %307, %306 : vector<2x32xf32>
    %309 = arith.divf %307, %308 : vector<2x32xf32>
    %310 = arith.mulf %301, %279 : vector<2x32xf32>
    %311 = arith.mulf %295, %303 : vector<2x32xf32>
    %312 = arith.addf %310, %311 : vector<2x32xf32>
    %313 = math.tanh %312 : vector<2x32xf32>
    %314 = arith.mulf %309, %313 : vector<2x32xf32>
    %315 = vector.shape_cast %314 : vector<2x32xf32> to vector<2x1x32xf32>
    %c0_94 = arith.constant 0 : index
    %316 = arith.index_cast %c7_i32 : i32 to index
    %c0_95 = arith.constant 0 : index
    %317 = vector.load %arg9[%c0_94, %316, %c0_95] : memref<2x8x32xf32, #tpu.memory_space<vmem>>, vector<2x1x32xf32>
    tpu.vector_store %arg9[%c0_94, %316, %c0_95], %315 {strides = array<i32>} : memref<2x8x32xf32, #tpu.memory_space<vmem>>, vector<2x1x32xf32>,
    %c8_i32 = arith.constant 8 : i32
    %318 = vector.shape_cast %314 : vector<2x32xf32> to vector<2x1x32xf32>
    %c0_96 = arith.constant 0 : index
    %c0_97 = arith.constant 0 : index
    %c0_98 = arith.constant 0 : index
    %319 = vector.load %arg10[%c0_96, %c0_97, %c0_98] : memref<2x1x32xf32, #tpu.memory_space<vmem>>, vector<2x1x32xf32>
    tpu.vector_store %arg10[%c0_96, %c0_97, %c0_98], %318 {strides = array<i32>} : memref<2x1x32xf32, #tpu.memory_space<vmem>>, vector<2x1x32xf32>,
    %320 = vector.shape_cast %312 : vector<2x32xf32> to vector<2x1x32xf32>
    %c0_99 = arith.constant 0 : index
    %c0_100 = arith.constant 0 : index
    %c0_101 = arith.constant 0 : index
    %321 = vector.load %arg11[%c0_99, %c0_100, %c0_101] : memref<2x1x32xf32, #tpu.memory_space<vmem>>, vector<2x1x32xf32>
    tpu.vector_store %arg11[%c0_99, %c0_100, %c0_101], %320 {strides = array<i32>} : memref<2x1x32xf32, #tpu.memory_space<vmem>>, vector<2x1x32xf32>,
    return
  }
  func.func @transform_0(%arg0: i32) -> (i32, i32, i32) {
    %c0_i32 = arith.constant 0 : i32
    %c0_i32_0 = arith.constant 0 : i32
    %c0_i32_1 = arith.constant 0 : i32
    return %arg0, %c0_i32, %c0_i32_0 : i32, i32, i32
  }
  func.func @transform_1(%arg0: i32) -> (i32, i32) {
    %c0_i32 = arith.constant 0 : i32
    %c0_i32_0 = arith.constant 0 : i32
    %c0_i32_1 = arith.constant 0 : i32
    return %c0_i32, %c0_i32_0 : i32, i32
  }
  func.func @transform_2(%arg0: i32) -> (i32, i32) {
    %c0_i32 = arith.constant 0 : i32
    %c0_i32_0 = arith.constant 0 : i32
    %c0_i32_1 = arith.constant 0 : i32
    return %c0_i32, %c0_i32_0 : i32, i32
  }
  func.func @transform_3(%arg0: i32) -> (i32, i32) {
    %c0_i32 = arith.constant 0 : i32
    %c0_i32_0 = arith.constant 0 : i32
    %c0_i32_1 = arith.constant 0 : i32
    return %c0_i32, %c0_i32_0 : i32, i32
  }
  func.func @transform_4(%arg0: i32) -> (i32, i32) {
    %c0_i32 = arith.constant 0 : i32
    %c0_i32_0 = arith.constant 0 : i32
    %c0_i32_1 = arith.constant 0 : i32
    return %c0_i32, %c0_i32_0 : i32, i32
  }
  func.func @transform_5(%arg0: i32) -> (i32, i32) {
    %c0_i32 = arith.constant 0 : i32
    %c0_i32_0 = arith.constant 0 : i32
    %c0_i32_1 = arith.constant 0 : i32
    return %c0_i32, %c0_i32_0 : i32, i32
  }
  func.func @transform_6(%arg0: i32) -> (i32, i32) {
    %c0_i32 = arith.constant 0 : i32
    %c0_i32_0 = arith.constant 0 : i32
    %c0_i32_1 = arith.constant 0 : i32
    return %c0_i32, %c0_i32_0 : i32, i32
  }
  func.func @transform_7(%arg0: i32) -> (i32, i32) {
    %c0_i32 = arith.constant 0 : i32
    %c0_i32_0 = arith.constant 0 : i32
    %c0_i32_1 = arith.constant 0 : i32
    return %c0_i32, %c0_i32_0 : i32, i32
  }
  func.func @transform_8(%arg0: i32) -> (i32, i32, i32) {
    %c0_i32 = arith.constant 0 : i32
    %c0_i32_0 = arith.constant 0 : i32
    %c0_i32_1 = arith.constant 0 : i32
    return %arg0, %c0_i32, %c0_i32_0 : i32, i32, i32
  }
  func.func @transform_9(%arg0: i32) -> (i32, i32, i32) {
    %c0_i32 = arith.constant 0 : i32
    %c0_i32_0 = arith.constant 0 : i32
    %c0_i32_1 = arith.constant 0 : i32
    return %arg0, %c0_i32, %c0_i32_0 : i32, i32, i32
  }
  func.func @transform_10(%arg0: i32) -> (i32, i32, i32) {
    %c0_i32 = arith.constant 0 : i32
    %c0_i32_0 = arith.constant 0 : i32
    %c0_i32_1 = arith.constant 0 : i32
    return %arg0, %c0_i32, %c0_i32_0 : i32, i32, i32
  }
  func.func @transform_11(%arg0: i32) -> (i32, i32, i32) {
    %c0_i32 = arith.constant 0 : i32
    %c0_i32_0 = arith.constant 0 : i32
    %c0_i32_1 = arith.constant 0 : i32
    return %arg0, %c0_i32, %c0_i32_0 : i32, i32, i32
  }
}

</mosaic_0001>

<bundles_post_ra>
// kernel: tpu_custom_call.1
= control target key start
LH: loop header
LB: loop body
LE: loop exit
PB: predicated region body
PF: predicated region fallthrough
CT: control target
= control target key end

     0   :  { %17 = vsyncpa [#allocation4], 0  ;;  %s2988_s0 = inlined_call_operand.hbm [shape: f32[2,8,16], index: 0, kind: input, shape index: {}]   ;;  %s2989_s1 = inlined_call_operand.vmem [shape: f32[16,8], index: 1, kind: input, shape index: {}]   ;;  %s2990_s2 = inlined_call_operand.vmem [shape: f32[1,8], index: 2, kind: input, shape index: {}]   ;;  %s2991_s3 = inlined_call_operand.vmem [shape: f32[8,4], index: 3, kind: input, shape index: {}]   ;;  %s2992_s4 = inlined_call_operand.vmem [shape: f32[1,4], index: 4, kind: input, shape index: {}]   ;;  %s2993_s5 = inlined_call_operand.hbm [shape: f32[16,128], index: 5, kind: input, shape index: {}]   ;;  %s2994_s6 = inlined_call_operand.vmem [shape: f32[32,128], index: 6, kind: input, shape index: {}]   ;;  %s2995_s7 = inlined_call_operand.vmem [shape: f32[1,128], index: 7, kind: input, shape index: {}]   ;;  %s2996_s8 = inlined_call_operand.hbm [shape: f32[2,8,32], index: 8, kind: output, shape index: {0}]   ;;  %s2997_s9 = inlined_call_operand.hbm [shape: f32[2,1,32], index: 9, kind: output, shape index: {1}]   ;;  %s2998_s10 = inlined_call_operand.hbm [shape: f32[2,1,32], index: 10, kind: output, shape index: {2}]   ;;  %s2999_s11 = inlined_call_operand.hbm [shape: f32[2,4,8], index: 11, kind: output, shape index: {3}]  }
   0x1   :  { %18 = vsyncpa [#allocation7], 0 }
   0x2   :  { %19 = vsyncpa [#allocation5], 0 }
   0x3   :  { %20 = vsyncpa [#allocation10], 0 }
   0x4   :  { %21 = vsyncpa [#allocation13], 0  ;;  %s2523_s17 = smov [#allocation3]  }
   0x5   :  { %s27_s18 = sshll.u32 %s2523_s17, 4  ;;  %s28_s18 = int_to_ptr.vmem [resolvable:$true] %s27_s18 }
   0x6   :  { %s2401_s19 = scalar_lea.vmem %s28_s18, 256  ;;  %p2406_p1 = scmp.lt.s32.totalorder %s28_s18, %s28_s18 }
   0x7   :  { %p2402_p0 = scmp.ne.s32.totalorder %s28_s18, %s2401_s19  ;;  %p2407_p2 = scmp.lt.s32.totalorder %s2401_s19, %s2401_s19 }
   0x9   :  { %p2408_p3 = por %p2407_p2, %p2406_p1 }
   0xb   :  { %p2409_p4 = pnand %p2408_p3, %p2402_p0 }
   0xd   :  { %2412 = shalt.err (!%p2409_p4)
}
   0xe   :  { %s2524_s20 = smov 128   ;;  %s2525_s21 = smov 8  }
   0xf   :  { %33 = dma.hbm_to_vmem [thread:$0]  %s2988_s0, 256, %s28_s18, [#allocation4], %s2524_s20, %s2524_s20, %s2525_s21  }
  0x10   :  { %s2526_s24 = smov [#allocation6]  }
  0x11   :  { %s47_s25 = sshll.u32 %s2526_s24, 4  ;;  %s48_s25 = int_to_ptr.vmem [resolvable:$true] %s47_s25 }
  0x12   :  { %s2421_s26 = scalar_lea.vmem %s48_s25, 256  ;;  %p2426_p6 = scmp.lt.s32.totalorder %s48_s25, %s48_s25 }
  0x13   :  { %p2422_p5 = scmp.ne.s32.totalorder %s48_s25, %s2421_s26  ;;  %p2427_p7 = scmp.lt.s32.totalorder %s2421_s26, %s2421_s26 }
  0x15   :  { %p2428_p8 = por %p2427_p7, %p2426_p6 }
  0x17   :  { %p2429_p9 = pnand %p2428_p8, %p2422_p5 }
  0x19   :  { %2432 = shalt.err (!%p2429_p9)
}
  0x1a   :  { %53 = dma.hbm_to_vmem [thread:$0]  %s2993_s5, 256, %s48_s25, [#allocation7], %s2524_s20, %s2524_s20, %s2525_s21  }
  0x1b   :  { %2513 = dma.done.wait [#allocation4], 256  }
  0x1c   :  { %2514 = vsyncadd [#allocation4], 4294967040 }
  0x1d   :  { %2515 = dma.done.wait [#allocation7], 256  }
  0x1e   :  { %2516 = vsyncadd [#allocation7], 4294967040  ;;  %vm84_vm0 = vcmask 130048   ;;  %v67_v0 = vld [vmem:[%s2989_s1 + $0x8] sm:$0xff]  ;;  %v66_v1 = vld [vmem:[%s2989_s1] sm:$0xff]  ;;  %vm174_vm1 = vcmask 64512   ;;  %v320_v17 = vlaneseq }
  0x1f   :  { %v2618_v2 = vld [vmem:[#allocation3] sm:$0xff]  ;;  %2095 = vmatprep.subr.mxu0 %v67_v0  ;;  %v2622_v3 = vld [vmem:[#allocation3 + $0x8] sm:$0xff]  ;;  %v69_v4 = vld [vmem:[%s2991_s3] sm:$0xff]  ;;  %v2527_v18 = vmov 1966171168   ;;  %vm2529_vm3 = vmmov 0  }
  0x20   :  { %2099 = vmatprep.mubr.msk.f32.mxu0 %vm84_vm0, %v2618_v2  ;;  %2096 = vmatpush3.msra.mxu0 %v67_v0  ;;  %v2006_v5 = vld [vmem:[%s2990_s2] ss:$0 sm:$0xff]  ;;  %v328_v19 = vunpack.c.l.s4 %v2527_v18  ;;  %v321_v20 = vshrl.u32 %v320_v17, 7  ;;  %v323_v24 = vand.u32 127, %v320_v17  ;;  %vm537_vm4 = vcmask 64519   ;;  %s2530_s25 = smov 64  }
  0x21   :  { %2097 = vmatprep.subr.mxu0 %v66_v1  ;;  %2102 = vmatprep.subr.mxu1 %v69_v4  ;;  %v2009_v12 = vld [vmem:[%s2992_s4] ss:$0 sm:$0xff]  ;;  %vm523_vm5 = vcmask 1041409   ;;  %vm526_vm6 = vcmask 1042434   ;;  %vm539_vm7 = vcmask 59392   ;;  %vm796_vm8 = vcmask 261120  }
  0x22   :  { %2098 = vmatpush3.msra.mxu0 %v66_v1  ;;  %2103 = vmatpush3.msra.mxu1 %v69_v4  ;;  %v329_v21 = vunpack.c.0.s8 %v328_v19  ;;  %v379_v25 = vsub.s32 0, %v321_v20  ;;  %vm2637_vm2 = vcmp.le.s32.totalorder %v323_v24, %v321_v20  ;;  %s2532_s26 = smov [#allocation12]   ;;  %vm932_vm9 = vcmask 253952  }
  0x23   :  { %2100 = vmatmul.mubr.msk.f32.vlgmr.msra.gmra.mxu0 %vm84_vm0, %v2622_v3  ;;  %s1982_s27 = sshll.u32 %s2532_s26, 4  ;;  %s1983_s27 = int_to_ptr.vmem [resolvable:$true] %s1982_s27 }
  0x24   :  { %v332_v22 = vsub.s32 %v329_v21, %v321_v20  ;;  %s2433_s28 = scalar_lea.vmem %s1983_s27, 128  ;;  %p2438_p11 = scmp.lt.s32.totalorder %s1983_s27, %s1983_s27 }
  0x25   :  { %p2434_p10 = scmp.ne.s32.totalorder %s1983_s27, %s2433_s28  ;;  %p2439_p12 = scmp.lt.s32.totalorder %s2433_s28, %s2433_s28 }
  0x27   :  { %p2440_p13 = por %p2439_p12, %p2438_p11 }
  0x29   :  { %p2441_p0 = pnand %p2440_p13, %p2434_p10 }
  0xe3   :  { %v2101_v6 = vpop.f32.mrf.mxu0 }
  0xe4   :  { %v163_v7 = vadd.f32 %v2101_v6, %v2006_v5 }
  0xe5   :  { %v157_v8 = vpop.f32.mrf.mxu0 }
  0xe6   :  { %v158_v9 = vadd.f32 %v2006_v5, %v157_v8 }
  0xe8   :  { %2229 = vtanh.f32 %v158_v9 }
  0xe9   :  { %2231 = vtanh.f32 %v163_v7 }
  0xf5   :  { %v2230_v10 = vpop.eup %2229 }
  0xf6   :  { %v2232_v11 = vpop.eup %2231  ;;  %2104 = vmatprep.mubr.msk.f32.mxu1 %vm174_vm1, %v2230_v10 }
  0xf7   :  { %2105 = vmatmul.mubr.msk.f32.vlgmr.msra.gmra.mxu1 %vm174_vm1, %v2232_v11 }
 0x1b7   :  { %v2106_v13 = vpop.f32.mrf.mxu1 }
 0x1b8   :  { %v253_v14 = vadd.f32 %v2106_v13, %v2009_v12 }
 0x1b9   :  { %v247_v15 = vpop.f32.mrf.mxu1 }
 0x1ba   :  { %288 = vxpose.xlu0.b32.start.end [1/1] (short) (narrow) %v253_v14, 8  ;;  %v248_v16 = vadd.f32 %v2009_v12, %v247_v15 }
 0x1be   :  { %256 = vxpose.xlu0.b32.start.end [1/1] (short) (narrow) %v248_v16, 8 }
 0x236   :  { %v304_v23 = vpop.trf.xlu0 }
 0x237   :  { %v357_v26 = vrot.slane %v304_v23, %v332_v22 }
 0x239   :  { %v358_v27 = vcombine.high %v357_v26, %v357_v26  ;;  %v365_v28 = vrot.slane %v357_v26, %v332_v22 }
 0x23a   :  { %v272_v29 = vpop.trf.xlu0 }
 0x23b   :  { %v372_v31 = vrot.slane %v358_v27, %v332_v22  ;;  %v333_v32 = vrot.slane %v272_v29, %v332_v22  ;;  %v396_v33 = vrot.slane %v365_v28, %v379_v25  ;;  %v373_v37 = vcombine.high %v365_v28, %v365_v28 }
 0x23d   :  { %v341_v34 = vrot.slane %v333_v32, %v332_v22  ;;  %v421_v35 = vsel %vm2637_vm2, %v396_v33, -1e+30  ;;  %v334_v38 = vcombine.high %v333_v32, %v333_v32  ;;  %v400_v40 = vrot.slane %v372_v31, %v379_v25 }
 0x23e   :  { %v437_v36 = vsel %vm174_vm1, %v421_v35, -inf  ;;  %v404_v45 = vrot.slane %v373_v37, %v379_v25  ;;  %v374_v57 = vcombine.high %v372_v31, %v372_v31 }
 0x23f   :  { %438 = vmax.xlane.f32.xlu0 %v437_v36  ;;  %v380_v39 = vrot.slane %v341_v34, %v379_v25  ;;  %v348_v43 = vrot.slane %v334_v38, %v332_v22  ;;  %v422_v44 = vsel %vm2637_vm2, %v400_v40, -1e+30  ;;  %v349_v47 = vcombine.high %v341_v34, %v341_v34 }
 0x240   :  { %v440_v46 = vsel %vm174_vm1, %v422_v44, -inf  ;;  %v423_v48 = vsel %vm2637_vm2, %v404_v45, -1e+30  ;;  %v408_v60 = vrot.slane %v374_v57, %v379_v25 }
 0x241   :  { %v417_v41 = vsel %vm2637_vm2, %v380_v39, -1e+30  ;;  %v384_v49 = vrot.slane %v348_v43, %v379_v25  ;;  %v443_v50 = vsel %vm174_vm1, %v423_v48, -inf  ;;  %v388_v52 = vrot.slane %v349_v47, %v379_v25 }
 0x242   :  { %v425_v42 = vsel %vm174_vm1, %v417_v41, -inf  ;;  %v350_v53 = vcombine.high %v348_v43, %v348_v43  ;;  %v424_v62 = vsel %vm2637_vm2, %v408_v60, -1e+30 }
 0x243   :  { %426 = vmax.xlane.f32.xlu1 %v425_v42  ;;  %v418_v51 = vsel %vm2637_vm2, %v384_v49, -1e+30  ;;  %v419_v55 = vsel %vm2637_vm2, %v388_v52, -1e+30  ;;  %v446_v63 = vsel %vm174_vm1, %v424_v62, -inf  ;;  %v2528_v42 = vmov 0.0  }
 0x244   :  { %v428_v54 = vsel %vm174_vm1, %v418_v51, -inf  ;;  %v392_v56 = vrot.slane %v350_v53, %v379_v25  ;;  %v431_v58 = vsel %vm174_vm1, %v419_v55, -inf  ;;  %2107 = vmatprep.subr.mxu1 %v2528_v42  ;;  %2112 = vmatprep.subr.mxu0 %v2528_v42 }
 0x245   :  { %2108 = vmatpush3.msra.mxu1 %v2618_v2  ;;  %2109 = vmatprep.mubr.msk.f32.mxu1 %vm2529_vm3, %v2528_v42 }
 0x246   :  { %v420_v59 = vsel %vm2637_vm2, %v392_v56, -1e+30  ;;  %2113 = vmatpush3.msra.mxu0 %v2622_v3  ;;  %2114 = vmatprep.mubr.msk.f32.mxu0 %vm2529_vm3, %v2528_v42 }
 0x247   :  { %441 = vmax.xlane.f32.xlu1 %v440_v46  ;;  %v434_v61 = vsel %vm174_vm1, %v420_v59, -inf  ;;  %2124 = vmatprep.subr.mxu0 %v2528_v42 }
 0x24b   :  { %444 = vmax.xlane.f32.xlu1 %v443_v50 }
 0x24f   :  { %429 = vmax.xlane.f32.xlu1 %v428_v54 }
 0x253   :  { %432 = vmax.xlane.f32.xlu1 %v431_v58 }
 0x257   :  { %435 = vmax.xlane.f32.xlu1 %v434_v61 }
 0x25b   :  { %447 = vmax.xlane.f32.xlu1 %v446_v63 }
 0x2c8   :  { %v439_v0 = vpop.xlane.xlu0 %438 }
 0x2c9   :  { %v453_v1 = vsub.f32 %v421_v35, %v439_v0 }
 0x2cb   :  { %v465_v4 = vmul.f32 1.442695, %v453_v1 }
 0x2cc   :  { %v427_v5 = vpop.xlane.xlu1 %426 }
 0x2cd   :  { %2233 = vpow2.f32 %v465_v4  ;;  %v449_v6 = vsub.f32 %v417_v41, %v427_v5 }
 0x2cf   :  { %v457_v7 = vmul.f32 1.442695, %v449_v6 }
 0x2d0   :  { %v442_v8 = vpop.xlane.xlu1 %441 }
 0x2d1   :  { %2235 = vpow2.f32 %v457_v7  ;;  %v454_v9 = vsub.f32 %v422_v44, %v442_v8 }
 0x2d3   :  { %v467_v10 = vmul.f32 1.442695, %v454_v9 }
 0x2d4   :  { %v445_v11 = vpop.xlane.xlu1 %444 }
 0x2d5   :  { %2237 = vpow2.f32 %v467_v10  ;;  %v455_v12 = vsub.f32 %v423_v48, %v445_v11 }
 0x2d7   :  { %v469_v13 = vmul.f32 1.442695, %v455_v12 }
 0x2d8   :  { %v430_v14 = vpop.xlane.xlu1 %429 }
 0x2d9   :  { %2239 = vpow2.f32 %v469_v13  ;;  %v450_v15 = vsub.f32 %v418_v51, %v430_v14 }
 0x2da   :  { %v2234_v16 = vpop.eup %2233 }
 0x2db   :  { %v459_v17 = vmul.f32 1.442695, %v450_v15  ;;  %v485_v18 = vsel %vm174_vm1, %v2234_v16, 0.0 }
 0x2dc   :  { %v433_v19 = vpop.xlane.xlu1 %432  ;;  %486 = vadd.xlane.f32.xlu1 %v485_v18 }
 0x2dd   :  { %2241 = vpow2.f32 %v459_v17  ;;  %v451_v20 = vsub.f32 %v419_v55, %v433_v19 }
 0x2de   :  { %v2236_v21 = vpop.eup %2235 }
 0x2df   :  { %v461_v22 = vmul.f32 1.442695, %v451_v20  ;;  %v473_v23 = vsel %vm174_vm1, %v2236_v21, 0.0 }
 0x2e0   :  { %v436_v24 = vpop.xlane.xlu1 %435  ;;  %474 = vadd.xlane.f32.xlu1 %v473_v23 }
 0x2e1   :  { %2243 = vpow2.f32 %v461_v22  ;;  %v452_v25 = vsub.f32 %v420_v59, %v436_v24 }
 0x2e2   :  { %v2238_v26 = vpop.eup %2237 }
 0x2e3   :  { %v463_v27 = vmul.f32 1.442695, %v452_v25  ;;  %v488_v28 = vsel %vm174_vm1, %v2238_v26, 0.0 }
 0x2e4   :  { %v448_v29 = vpop.xlane.xlu1 %447  ;;  %489 = vadd.xlane.f32.xlu1 %v488_v28 }
 0x2e5   :  { %2245 = vpow2.f32 %v463_v27  ;;  %v456_v30 = vsub.f32 %v424_v62, %v448_v29  ;;  %v72_v29 = vld [vmem:[#allocation6 + $0x8] sm:$0xff] }
 0x2e6   :  { %v2240_v31 = vpop.eup %2239  ;;  %2117 = vmatprep.subr.mxu1 %v72_v29 }
 0x2e7   :  { %v471_v32 = vmul.f32 1.442695, %v456_v30  ;;  %v491_v33 = vsel %vm174_vm1, %v2240_v31, 0.0  ;;  %v71_v30 = vld [vmem:[#allocation6] sm:$0xff] }
 0x2e8   :  { %492 = vadd.xlane.f32.xlu1 %v491_v33  ;;  %v2720_v33 = vld [vmem:[%s2994_s6 + $0x8] sm:$0xff] }
 0x2e9   :  { %2247 = vpow2.f32 %v471_v32  ;;  %v2715_v32 = vld [vmem:[%s2994_s6 + $0x10] sm:$0xff] }
 0x2ea   :  { %v2242_v34 = vpop.eup %2241 }
 0x2eb   :  { %v476_v35 = vsel %vm174_vm1, %v2242_v34, 0.0 }
 0x2ec   :  { %477 = vadd.xlane.f32.xlu1 %v476_v35 }
 0x2ee   :  { %v2244_v36 = vpop.eup %2243 }
 0x2ef   :  { %v479_v37 = vsel %vm174_vm1, %v2244_v36, 0.0 }
 0x2f0   :  { %480 = vadd.xlane.f32.xlu1 %v479_v37 }
 0x2f2   :  { %v2246_v38 = vpop.eup %2245 }
 0x2f3   :  { %v482_v39 = vsel %vm174_vm1, %v2246_v38, 0.0 }
 0x2f4   :  { %483 = vadd.xlane.f32.xlu1 %v482_v39 }
 0x2f6   :  { %v2672_v40 = vpop.eup %2247 }
 0x2f7   :  { %v494_v41 = vsel %vm174_vm1, %v2672_v40, 0.0 }
 0x2f8   :  { %495 = vadd.xlane.f32.xlu0 %v494_v41  ;;  %v2014_v41 = vld [vmem:[%s2995_s7] ss:$0 sm:$0xff]  ;;  %s2531_s7 = smov 32  }
 0x365   :  { %v487_v43 = vpop.xlane.xlu1 %486 }
 0x366   :  { %2249 = vrcp.f32 %v487_v43 }
 0x369   :  { %v475_v44 = vpop.xlane.xlu1 %474 }
 0x36a   :  { %2251 = vrcp.f32 %v475_v44 }
 0x36d   :  { %v490_v45 = vpop.xlane.xlu1 %489 }
 0x371   :  { %v493_v46 = vpop.xlane.xlu1 %492 }
 0x373   :  { %v2250_v47 = vpop.eup %2249 }
 0x374   :  { %v509_v2 = vmul.f32 %v2250_v47, %v2234_v16 }
 0x375   :  { %v478_v48 = vpop.xlane.xlu1 %477 }
 0x376   :  { %2253 = vrcp.f32 %v478_v48  ;;  %541 = vst.msk [vmem:[#allocation12 - $0x3] sm:$0x80] %vm537_vm4, %v509_v2  ;;  %v550_v9 = vsel %vm174_vm1, %v509_v2, 0.0 }
 0x377   :  { %v2252_v49 = vpop.eup %2251  ;;  %2255 = vrcp.f32 %v490_v45 }
 0x378   :  { %v505_v50 = vmul.f32 %v2252_v49, %v2236_v21  ;;  %2257 = vrcp.f32 %v493_v46 }
 0x379   :  { %v481_v3 = vpop.xlane.xlu1 %480 }
 0x37a   :  { %2259 = vrcp.f32 %v481_v3  ;;  %538 = vst.msk [vmem:[#allocation12 - $0x7] sm:$0x80] %vm537_vm4, %v505_v50  ;;  %v543_v61 = vsel %vm174_vm1, %v505_v50, 0.0 }
 0x37d   :  { %v484_v51 = vpop.xlane.xlu1 %483 }
 0x37e   :  { %2261 = vrcp.f32 %v484_v51 }
 0x381   :  { %v496_v52 = vpop.xlane.xlu0 %495 }
 0x382   :  { %2263 = vrcp.f32 %v496_v52 }
 0x383   :  { %v2254_v53 = vpop.eup %2253 }
 0x384   :  { %v506_v54 = vmul.f32 %v2254_v53, %v2242_v34  ;;  %v2256_v55 = vpop.eup %2255  ;;  %v2727_v34 = vld [vmem:[%s2994_s6] sm:$0xff] }
 0x385   :  { %v2258_v56 = vpop.eup %2257  ;;  %v510_v58 = vmul.f32 %v2256_v55, %v2238_v26 }
 0x386   :  { %v544_v59 = vsel %vm174_vm1, %v506_v54, 0.0  ;;  %v511_v62 = vmul.f32 %v2258_v56, %v2240_v31  ;;  %v521_v7 = vrot.slane %v506_v54, 7  ;;  %v2707_v31 = vld [vmem:[%s2994_s6 + $0x18] sm:$0xff] }
 0x387   :  { %v2260_v57 = vpop.eup %2259  ;;  %v545_v4 = vadd.f32 %v544_v59, %v543_v61  ;;  %v551_v5 = vsel %vm174_vm1, %v510_v58, 0.0  ;;  %v528_v20 = vrot.slane %v510_v58, 7 }
 0x388   :  { %v507_v60 = vmul.f32 %v2260_v57, %v2244_v36  ;;  %v553_v12 = vsel %vm174_vm1, %v511_v62, 0.0  ;;  %v529_v14 = vrot.slane %v511_v62, 6  ;;  %v552_v16 = vadd.f32 %v551_v5, %v550_v9 }
 0x38a   :  { %v546_v63 = vsel %vm174_vm1, %v507_v60, 0.0  ;;  %v522_v1 = vrot.slane %v507_v60, 6  ;;  %v554_v22 = vadd.f32 %v553_v12, %v552_v16  ;;  %v530_v26 = vsel %vm523_vm5, %v529_v14, %v528_v20 }
 0x38b   :  { %v2262_v0 = vpop.eup %2261  ;;  %v547_v8 = vadd.f32 %v546_v63, %v545_v4 }
 0x38c   :  { %v508_v6 = vmul.f32 %v2262_v0, %v2246_v38  ;;  %v524_v17 = vsel %vm523_vm5, %v522_v1, %v521_v7 }
 0x38e   :  { %v525_v10 = vrot.slane %v508_v6, 5  ;;  %v548_v11 = vsel %vm174_vm1, %v508_v6, 0.0 }
 0x38f   :  { %v2264_v13 = vpop.eup %2263  ;;  %v549_v15 = vadd.f32 %v548_v11, %v547_v8 }
 0x390   :  { %v512_v18 = vmul.f32 %v2264_v13, %v2672_v40  ;;  %v527_v19 = vsel %vm526_vm6, %v525_v10, %v524_v17 }
 0x391   :  { %v557_v21 = vmul.f32 0.25, %v549_v15  ;;  %540 = vst.msk [vmem:[#allocation12 + $0x1] sm:$0x7] %vm539_vm7, %v527_v19 }
 0x392   :  { %v531_v23 = vrot.slane %v512_v18, 5  ;;  %v555_v24 = vsel %vm174_vm1, %v512_v18, 0.0 }
 0x393   :  { %2110 = vmatmul.mubr.msk.f32.vlgmr.msra.gmra.mxu1 %vm174_vm1, %v557_v21  ;;  %v556_v25 = vadd.f32 %v555_v24, %v554_v22 }
 0x394   :  { %v532_v27 = vsel %vm526_vm6, %v531_v23, %v530_v26  ;;  %2118 = vmatpush3.msra.mxu1 %v72_v29 }
 0x395   :  { %v558_v28 = vmul.f32 0.25, %v556_v25  ;;  %542 = vst.msk [vmem:[#allocation12 + $0x5] sm:$0x7] %vm539_vm7, %v532_v27  ;;  %2119 = vmatprep.subr.mxu1 %v71_v30 }
 0x396   :  { %2120 = vmatpush3.msra.mxu1 %v71_v30 }
 0x397   :  { %2115 = vmatmul.mubr.msk.f32.vlgmr.msra.gmra.mxu0 %vm174_vm1, %v558_v28  ;;  %2135 = vmatprep.subr.mxu1 %v2528_v42 }
 0x398   :  { %2132 = vmatprep.mubr.msk.f32.mxu0 %vm2529_vm3, %v2528_v42  ;;  %2125 = vmatpush3.msra.mxu0 %v2707_v31 }
 0x399   :  { %2126 = vmatprep.subr.mxu0 %v2528_v42 }
 0x39a   :  { %2127 = vmatpush3.msra.mxu0 %v2715_v32 }
 0x39b   :  { %2128 = vmatprep.subr.mxu0 %v2528_v42 }
 0x39c   :  { %2129 = vmatpush3.msra.mxu0 %v2720_v33 }
 0x39d   :  { %2130 = vmatprep.subr.mxu0 %v2528_v42 }
 0x39e   :  { %2131 = vmatpush3.msra.mxu0 %v2727_v34 }
 0x39f   :  { %2133 = vmatmul.mubr.f32.vlgmr.msra.gmra.mxu0 %v2528_v42  ;;  %2146 = vmatprep.subr.mxu0 %v2528_v42 }
 0x3a0   :  { %2147 = vmatpush3.msra.mxu0 %v2707_v31  ;;  %2154 = vmatprep.mubr.msk.f32.mxu0 %vm2529_vm3, %v2528_v42 }
 0x3a1   :  { %2148 = vmatprep.subr.mxu0 %v2528_v42 }
 0x3a2   :  { %2149 = vmatpush3.msra.mxu0 %v2715_v32 }
 0x3a3   :  { %2150 = vmatprep.subr.mxu0 %v2528_v42 }
 0x3a4   :  { %2151 = vmatpush3.msra.mxu0 %v2720_v33 }
 0x3a5   :  { %2152 = vmatprep.subr.mxu0 %v2528_v42 }
 0x3a6   :  { %2153 = vmatpush3.msra.mxu0 %v2727_v34 }
 0x3a7   :  { %2168 = vmatprep.subr.mxu0 %v2528_v42 }
 0x453   :  { %v628_v35 = vpop.f32.mrf.mxu1 }
 0x454   :  { %2121 = vmatprep.mubr.msk.f32.mxu1 %vm84_vm0, %v628_v35 }
 0x455   :  { %v2111_v36 = vpop.f32.mrf.mxu1 }
 0x457   :  { %v701_v37 = vpop.f32.mrf.mxu0 }
 0x458   :  { %2122 = vmatmul.mubr.msk.f32.vlgmr.msra.gmra.mxu1 %vm84_vm0, %v701_v37 }
 0x459   :  { %v2116_v38 = vpop.f32.mrf.mxu0  ;;  %2136 = vmatpush3.msra.mxu1 %v2707_v31  ;;  %2143 = vmatprep.mubr.msk.f32.mxu1 %vm2529_vm3, %v2528_v42 }
 0x45a   :  { %2137 = vmatprep.subr.mxu1 %v2528_v42 }
 0x45b   :  { %2138 = vmatpush3.msra.mxu1 %v2715_v32 }
 0x45c   :  { %2139 = vmatprep.subr.mxu1 %v2528_v42 }
 0x45d   :  { %2140 = vmatpush3.msra.mxu1 %v2720_v33 }
 0x45e   :  { %2141 = vmatprep.subr.mxu1 %v2528_v42 }
 0x45f   :  { %2142 = vmatpush3.msra.mxu1 %v2727_v34  ;;  %v866_v39 = vpop.f32.mrf.mxu0 }
 0x460   :  { %2157 = vmatprep.subr.mxu1 %v2528_v42  ;;  %v871_v47 = vrot.slane %v866_v39, 1 }
 0x461   :  { %v2134_v40 = vpop.f32.mrf.mxu0 }
 0x518   :  { %v2123_v43 = vpop.f32.mrf.mxu1 }
 0x519   :  { %v789_v44 = vadd.f32 %v2123_v43, %v2014_v41 }
 0x51a   :  { %v783_v45 = vpop.f32.mrf.mxu1 }
 0x51b   :  { %793 = vst [vmem:[#allocation2 + $0x8] sm:$0xff] %v789_v44  ;;  %v784_v46 = vadd.f32 %v2014_v41, %v783_v45 }
 0x51d   :  { %792 = vst [vmem:[#allocation2] sm:$0xff] %v784_v46 }
 0x522   :  { %v795_v2 = vld [vmem:[#allocation2 + $0x8] sm:$0x1]  ;;  %v936_v21 = vld [vmem:[#allocation2 + $0x9] sm:$0x1] }
 0x523   :  { %v875_v48 = vadd.f32 %v871_v47, %v795_v2 }
 0x524   :  { %v794_v49 = vld [vmem:[#allocation2] sm:$0x1]  ;;  %v935_v17 = vld [vmem:[#allocation2 + $0x1] sm:$0x1] }
 0x525   :  { %v874_v50 = vadd.f32 %v866_v39, %v794_v49  ;;  %2265 = vtanh.f32 %v875_v48  ;;  %v2018_v52 = vmul.f32 -1.442695, %v875_v48 }
 0x527   :  { %2267 = vtanh.f32 %v874_v50  ;;  %v2017_v53 = vmul.f32 -1.442695, %v874_v50 }
 0x528   :  { %2269 = vpow2.f32 %v2018_v52 }
 0x529   :  { %2271 = vpow2.f32 %v2017_v53 }
 0x532   :  { %v2266_v3 = vpop.eup %2265 }
 0x533   :  { %896 = vrot.lane.b32.xlu1 %v2266_v3, %s2530_s25 }
 0x534   :  { %v2268_v51 = vpop.eup %2267 }
 0x535   :  { %894 = vrot.lane.b32.xlu0 %v2268_v51, %s2530_s25  ;;  %v2270_v54 = vpop.eup %2269 }
 0x536   :  { %v883_v55 = vadd.f32 1.0, %v2270_v54  ;;  %v2272_v56 = vpop.eup %2271 }
 0x537   :  { %v882_v57 = vadd.f32 1.0, %v2272_v56  ;;  %v1077_v56 = vld [vmem:[#allocation2 + $0x2] sm:$0x1] }
 0x538   :  { %2273 = vrcp.f32 %v883_v55 }
 0x539   :  { %2275 = vrcp.f32 %v882_v57 }
 0x545   :  { %v2274_v58 = vpop.eup %2273 }
 0x546   :  { %v2276_v62 = vpop.eup %2275  ;;  %v891_v0 = vmul.f32 0.0, %v2274_v58 }
 0x547   :  { %v890_v5 = vmul.f32 0.0, %v2276_v62 }
 0x5a5   :  { %v897_v59 = vpop.permute.xlu1 %896 }
 0x5a6   :  { %v901_v60 = vmul.f32 %v2274_v58, %v897_v59 }
 0x5a7   :  { %v895_v61 = vpop.permute.xlu0 %894 }
 0x5a8   :  { %906 = vrot.lane.b32.xlu1 %v901_v60, %s2531_s7  ;;  %v900_v63 = vmul.f32 %v2276_v62, %v895_v61  ;;  %v1078_v60 = vld [vmem:[#allocation2 + $0xa] sm:$0x1] }
 0x5ac   :  { %904 = vrot.lane.b32.xlu1 %v900_v63, %s2531_s7 }
 0x61a   :  { %v907_v1 = vpop.permute.xlu1 %906 }
 0x61b   :  { %v2763_v4 = vadd.f32 %v907_v1, %v891_v0 }
 0x61d   :  { %2277 = vtanh.f32 %v2763_v4 }
 0x61e   :  { %v905_v6 = vpop.permute.xlu1 %904 }
 0x61f   :  { %v910_v7 = vadd.f32 %v905_v6, %v890_v5 }
 0x621   :  { %2279 = vtanh.f32 %v910_v7 }
 0x62a   :  { %v2278_v8 = vpop.eup %2277 }
 0x62b   :  { %918 = vrot.lane.b32.xlu0 %v2278_v8, %s2530_s25 }
 0x62e   :  { %v2280_v9 = vpop.eup %2279 }
 0x62f   :  { %916 = vrot.lane.b32.xlu1 %v2280_v9, %s2530_s25 }
 0x69d   :  { %v919_v10 = vpop.permute.xlu0 %918 }
 0x69e   :  { %v2768_v11 = vmul.f32 %v2274_v58, %v919_v10 }
 0x6a0   :  { %v937_v13 = vrot.slane %v2768_v11, 7 }
 0x6a1   :  { %v917_v12 = vpop.permute.xlu1 %916 }
 0x6a2   :  { %v2771_v14 = vmul.f32 %v2276_v62, %v917_v12 }
 0x6a4   :  { %v938_v15 = vsel %vm523_vm5, %v937_v13, %v2771_v14 }
 0x6a5   :  { %939 = vrot.lane.b32.xlu0 %v938_v15, %s2531_s7 }
 0x717   :  { %v940_v16 = vpop.permute.xlu0 %939 }
 0x718   :  { %2144 = vmatmul.mubr.msk.f32.vlgmr.msra.gmra.mxu1 %vm796_vm8, %v940_v16 }
 0x719   :  { %2158 = vmatpush3.msra.mxu1 %v2707_v31  ;;  %2165 = vmatprep.mubr.msk.f32.mxu1 %vm2529_vm3, %v2528_v42 }
 0x71a   :  { %2159 = vmatprep.subr.mxu1 %v2528_v42 }
 0x71b   :  { %2160 = vmatpush3.msra.mxu1 %v2715_v32 }
 0x71c   :  { %2161 = vmatprep.subr.mxu1 %v2528_v42 }
 0x71d   :  { %2162 = vmatpush3.msra.mxu1 %v2720_v33 }
 0x71e   :  { %2163 = vmatprep.subr.mxu1 %v2528_v42 }
 0x71f   :  { %2164 = vmatpush3.msra.mxu1 %v2727_v34 }
 0x720   :  { %2179 = vmatprep.subr.mxu1 %v2528_v42 }
 0x7d8   :  { %v1009_v18 = vpop.f32.mrf.mxu1 }
 0x7d9   :  { %v1014_v19 = vrot.slane %v1009_v18, 1  ;;  %v1017_v20 = vadd.f32 %v1009_v18, %v935_v17 }
 0x7da   :  { %v2145_v22 = vpop.f32.mrf.mxu1 }
 0x7db   :  { %v1018_v23 = vadd.f32 %v1014_v19, %v936_v21  ;;  %2281 = vtanh.f32 %v1017_v20  ;;  %v2020_v26 = vmul.f32 -1.442695, %v1017_v20 }
 0x7dd   :  { %2283 = vtanh.f32 %v1018_v23  ;;  %v2021_v27 = vmul.f32 -1.442695, %v1018_v23 }
 0x7de   :  { %2285 = vpow2.f32 %v2020_v26 }
 0x7df   :  { %2287 = vpow2.f32 %v2021_v27 }
 0x7e8   :  { %v2282_v24 = vpop.eup %2281 }
 0x7e9   :  { %1037 = vrot.lane.b32.xlu0 %v2282_v24, %s2530_s25 }
 0x7ea   :  { %v2284_v25 = vpop.eup %2283 }
 0x7eb   :  { %1039 = vrot.lane.b32.xlu1 %v2284_v25, %s2530_s25  ;;  %v2286_v28 = vpop.eup %2285 }
 0x7ec   :  { %v2288_v29 = vpop.eup %2287  ;;  %v1025_v30 = vadd.f32 1.0, %v2286_v28 }
 0x7ed   :  { %v1026_v35 = vadd.f32 1.0, %v2288_v29 }
 0x7ee   :  { %2289 = vrcp.f32 %v1025_v30 }
 0x7ef   :  { %2291 = vrcp.f32 %v1026_v35 }
 0x7fb   :  { %v2290_v36 = vpop.eup %2289 }
 0x7fc   :  { %v2292_v39 = vpop.eup %2291  ;;  %v1033_v43 = vmul.f32 %v2290_v36, %v910_v7 }
 0x7fd   :  { %v1034_v46 = vmul.f32 %v2292_v39, %v2763_v4 }
 0x85b   :  { %v1038_v37 = vpop.permute.xlu0 %1037 }
 0x85c   :  { %v1043_v38 = vmul.f32 %v2290_v36, %v1038_v37 }
 0x85d   :  { %v1040_v40 = vpop.permute.xlu1 %1039 }
 0x85e   :  { %1047 = vrot.lane.b32.xlu0 %v1043_v38, %s2531_s7  ;;  %v1044_v41 = vmul.f32 %v2292_v39, %v1040_v40  ;;  %v1220_v40 = vld [vmem:[#allocation2 + $0xb] sm:$0x1] }
 0x860   :  { %1049 = vrot.lane.b32.xlu1 %v1044_v41, %s2531_s7 }
 0x8d0   :  { %v1048_v44 = vpop.permute.xlu0 %1047 }
 0x8d1   :  { %v1053_v45 = vadd.f32 %v1048_v44, %v1033_v43 }
 0x8d2   :  { %v1050_v47 = vpop.permute.xlu1 %1049 }
 0x8d3   :  { %2293 = vtanh.f32 %v1053_v45  ;;  %v1054_v2 = vadd.f32 %v1050_v47, %v1034_v46 }
 0x8d5   :  { %2295 = vtanh.f32 %v1054_v2 }
 0x8e0   :  { %v2294_v48 = vpop.eup %2293 }
 0x8e1   :  { %1059 = vrot.lane.b32.xlu0 %v2294_v48, %s2530_s25 }
 0x8e2   :  { %v2296_v49 = vpop.eup %2295 }
 0x8e3   :  { %1061 = vrot.lane.b32.xlu1 %v2296_v49, %s2530_s25 }
 0x953   :  { %v1060_v50 = vpop.permute.xlu0 %1059 }
 0x954   :  { %v2796_v52 = vmul.f32 %v2290_v36, %v1060_v50  ;;  %v1219_v36 = vld [vmem:[#allocation2 + $0x3] sm:$0x1] }
 0x955   :  { %v1062_v3 = vpop.permute.xlu1 %1061 }
 0x956   :  { %v2794_v51 = vmul.f32 %v2292_v39, %v1062_v3 }
 0x958   :  { %v1079_v53 = vrot.slane %v2794_v51, 7 }
 0x95a   :  { %v1080_v54 = vsel %vm523_vm5, %v1079_v53, %v2796_v52 }
 0x95b   :  { %1081 = vrot.lane.b32.xlu1 %v1080_v54, %s2531_s7 }
 0x9cd   :  { %v1082_v55 = vpop.permute.xlu1 %1081 }
 0x9ce   :  { %2155 = vmatmul.mubr.msk.f32.vlgmr.msra.gmra.mxu0 %vm796_vm8, %v1082_v55 }
 0x9cf   :  { %2169 = vmatpush3.msra.mxu0 %v2707_v31  ;;  %2176 = vmatprep.mubr.msk.f32.mxu0 %vm2529_vm3, %v2528_v42 }
 0x9d0   :  { %2170 = vmatprep.subr.mxu0 %v2528_v42 }
 0x9d1   :  { %2171 = vmatpush3.msra.mxu0 %v2715_v32 }
 0x9d2   :  { %2172 = vmatprep.subr.mxu0 %v2528_v42 }
 0x9d3   :  { %2173 = vmatpush3.msra.mxu0 %v2720_v33 }
 0x9d4   :  { %2174 = vmatprep.subr.mxu0 %v2528_v42 }
 0x9d5   :  { %2175 = vmatpush3.msra.mxu0 %v2727_v34 }
 0x9d6   :  { %2190 = vmatprep.subr.mxu0 %v2528_v42 }
 0xa8e   :  { %v1151_v57 = vpop.f32.mrf.mxu0 }
 0xa8f   :  { %v1156_v58 = vrot.slane %v1151_v57, 1  ;;  %v1159_v59 = vadd.f32 %v1151_v57, %v1077_v56 }
 0xa90   :  { %v2156_v61 = vpop.f32.mrf.mxu0 }
 0xa91   :  { %v1160_v62 = vadd.f32 %v1156_v58, %v1078_v60  ;;  %2297 = vtanh.f32 %v1159_v59  ;;  %v2023_v1 = vmul.f32 -1.442695, %v1159_v59 }
 0xa93   :  { %2299 = vtanh.f32 %v1160_v62  ;;  %v2024_v4 = vmul.f32 -1.442695, %v1160_v62 }
 0xa94   :  { %2301 = vpow2.f32 %v2023_v1 }
 0xa95   :  { %2303 = vpow2.f32 %v2024_v4 }
 0xa9e   :  { %v2298_v63 = vpop.eup %2297 }
 0xa9f   :  { %1179 = vrot.lane.b32.xlu1 %v2298_v63, %s2530_s25 }
 0xaa0   :  { %v2300_v0 = vpop.eup %2299 }
 0xaa1   :  { %1181 = vrot.lane.b32.xlu0 %v2300_v0, %s2530_s25  ;;  %v2302_v5 = vpop.eup %2301 }
 0xaa2   :  { %v2304_v6 = vpop.eup %2303  ;;  %v1167_v7 = vadd.f32 1.0, %v2302_v5 }
 0xaa3   :  { %v1168_v8 = vadd.f32 1.0, %v2304_v6 }
 0xaa4   :  { %2305 = vrcp.f32 %v1167_v7 }
 0xaa5   :  { %2307 = vrcp.f32 %v1168_v8 }
 0xab1   :  { %v2306_v9 = vpop.eup %2305 }
 0xab2   :  { %v2308_v13 = vpop.eup %2307  ;;  %v1175_v17 = vmul.f32 %v2306_v9, %v1053_v45 }
 0xab3   :  { %v1176_v20 = vmul.f32 %v2308_v13, %v1054_v2 }
 0xb11   :  { %v1180_v10 = vpop.permute.xlu1 %1179 }
 0xb12   :  { %v1185_v12 = vmul.f32 %v2306_v9, %v1180_v10 }
 0xb13   :  { %v1182_v15 = vpop.permute.xlu0 %1181 }
 0xb14   :  { %1189 = vrot.lane.b32.xlu1 %v1185_v12, %s2531_s7  ;;  %v1186_v16 = vmul.f32 %v2308_v13, %v1182_v15  ;;  %v1361_v12 = vld [vmem:[#allocation2 + $0x4] sm:$0x1] }
 0xb16   :  { %1191 = vrot.lane.b32.xlu0 %v1186_v16, %s2531_s7 }
 0xb86   :  { %v1190_v18 = vpop.permute.xlu1 %1189 }
 0xb87   :  { %v1195_v19 = vadd.f32 %v1190_v18, %v1175_v17  ;;  %v1362_v17 = vld [vmem:[#allocation2 + $0xc] sm:$0x1] }
 0xb88   :  { %v1192_v21 = vpop.permute.xlu0 %1191 }
 0xb89   :  { %2309 = vtanh.f32 %v1195_v19  ;;  %v1196_v22 = vadd.f32 %v1192_v21, %v1176_v20 }
 0xb8b   :  { %2311 = vtanh.f32 %v1196_v22 }
 0xb96   :  { %v2310_v23 = vpop.eup %2309 }
 0xb97   :  { %1201 = vrot.lane.b32.xlu1 %v2310_v23, %s2530_s25 }
 0xb98   :  { %v2312_v24 = vpop.eup %2311 }
 0xb99   :  { %1203 = vrot.lane.b32.xlu0 %v2312_v24, %s2530_s25 }
 0xc09   :  { %v1202_v25 = vpop.permute.xlu1 %1201 }
 0xc0a   :  { %v2821_v28 = vmul.f32 %v2306_v9, %v1202_v25 }
 0xc0b   :  { %v1204_v26 = vpop.permute.xlu0 %1203 }
 0xc0c   :  { %v2819_v27 = vmul.f32 %v2308_v13, %v1204_v26 }
 0xc0e   :  { %v1221_v29 = vrot.slane %v2819_v27, 7 }
 0xc10   :  { %v1222_v30 = vsel %vm523_vm5, %v1221_v29, %v2821_v28 }
 0xc11   :  { %1223 = vrot.lane.b32.xlu0 %v1222_v30, %s2531_s7 }
 0xc83   :  { %v1224_v35 = vpop.permute.xlu0 %1223 }
 0xc84   :  { %2166 = vmatmul.mubr.msk.f32.vlgmr.msra.gmra.mxu1 %vm796_vm8, %v1224_v35 }
 0xc85   :  { %2180 = vmatpush3.msra.mxu1 %v2707_v31  ;;  %2187 = vmatprep.mubr.msk.f32.mxu1 %vm2529_vm3, %v2528_v42 }
 0xc86   :  { %2181 = vmatprep.subr.mxu1 %v2528_v42 }
 0xc87   :  { %2182 = vmatpush3.msra.mxu1 %v2715_v32 }
 0xc88   :  { %2183 = vmatprep.subr.mxu1 %v2528_v42 }
 0xc89   :  { %2184 = vmatpush3.msra.mxu1 %v2720_v33 }
 0xc8a   :  { %2185 = vmatprep.subr.mxu1 %v2528_v42 }
 0xc8b   :  { %2186 = vmatpush3.msra.mxu1 %v2727_v34 }
 0xc8c   :  { %2201 = vmatprep.subr.mxu1 %v2528_v42 }
 0xd44   :  { %v1293_v37 = vpop.f32.mrf.mxu1 }
 0xd45   :  { %v1298_v38 = vrot.slane %v1293_v37, 1  ;;  %v1301_v39 = vadd.f32 %v1293_v37, %v1219_v36 }
 0xd46   :  { %v2167_v41 = vpop.f32.mrf.mxu1 }
 0xd47   :  { %v1302_v43 = vadd.f32 %v1298_v38, %v1220_v40  ;;  %2313 = vtanh.f32 %v1301_v39  ;;  %v2026_v46 = vmul.f32 -1.442695, %v1301_v39 }
 0xd49   :  { %2315 = vtanh.f32 %v1302_v43  ;;  %v2027_v47 = vmul.f32 -1.442695, %v1302_v43 }
 0xd4a   :  { %2317 = vpow2.f32 %v2026_v46 }
 0xd4b   :  { %2319 = vpow2.f32 %v2027_v47 }
 0xd54   :  { %v2314_v44 = vpop.eup %2313 }
 0xd55   :  { %1321 = vrot.lane.b32.xlu0 %v2314_v44, %s2530_s25 }
 0xd56   :  { %v2316_v45 = vpop.eup %2315 }
 0xd57   :  { %1323 = vrot.lane.b32.xlu1 %v2316_v45, %s2530_s25  ;;  %v2318_v2 = vpop.eup %2317 }
 0xd58   :  { %v2320_v48 = vpop.eup %2319  ;;  %v1309_v49 = vadd.f32 1.0, %v2318_v2 }
 0xd59   :  { %v1310_v50 = vadd.f32 1.0, %v2320_v48 }
 0xd5a   :  { %2321 = vrcp.f32 %v1309_v49 }
 0xd5b   :  { %2323 = vrcp.f32 %v1310_v50 }
 0xd67   :  { %v2322_v3 = vpop.eup %2321 }
 0xd68   :  { %v2324_v55 = vpop.eup %2323  ;;  %v1317_v58 = vmul.f32 %v2322_v3, %v1195_v19 }
 0xd69   :  { %v1318_v61 = vmul.f32 %v2324_v55, %v1196_v22 }
 0xdc7   :  { %v1322_v53 = vpop.permute.xlu0 %1321 }
 0xdc8   :  { %v1327_v54 = vmul.f32 %v2322_v3, %v1322_v53 }
 0xdc9   :  { %v1324_v56 = vpop.permute.xlu1 %1323 }
 0xdca   :  { %1331 = vrot.lane.b32.xlu0 %v1327_v54, %s2531_s7  ;;  %v1328_v57 = vmul.f32 %v2324_v55, %v1324_v56  ;;  %v1503_v56 = vld [vmem:[#allocation2 + $0x5] sm:$0x1] }
 0xdcc   :  { %1333 = vrot.lane.b32.xlu1 %v1328_v57, %s2531_s7 }
 0xe3c   :  { %v1332_v59 = vpop.permute.xlu0 %1331 }
 0xe3d   :  { %v1337_v60 = vadd.f32 %v1332_v59, %v1317_v58 }
 0xe3e   :  { %v1334_v62 = vpop.permute.xlu1 %1333 }
 0xe3f   :  { %2325 = vtanh.f32 %v1337_v60  ;;  %v1338_v63 = vadd.f32 %v1334_v62, %v1318_v61 }
 0xe41   :  { %2327 = vtanh.f32 %v1338_v63 }
 0xe4c   :  { %v2326_v0 = vpop.eup %2325 }
 0xe4d   :  { %1343 = vrot.lane.b32.xlu0 %v2326_v0, %s2530_s25 }
 0xe4e   :  { %v2328_v1 = vpop.eup %2327 }
 0xe4f   :  { %1345 = vrot.lane.b32.xlu1 %v2328_v1, %s2530_s25 }
 0xebf   :  { %v1344_v4 = vpop.permute.xlu0 %1343 }
 0xec0   :  { %v2846_v7 = vmul.f32 %v2322_v3, %v1344_v4 }
 0xec1   :  { %v1346_v5 = vpop.permute.xlu1 %1345 }
 0xec2   :  { %v2844_v6 = vmul.f32 %v2324_v55, %v1346_v5 }
 0xec4   :  { %v1363_v8 = vrot.slane %v2844_v6, 7 }
 0xec6   :  { %v1364_v9 = vsel %vm523_vm5, %v1363_v8, %v2846_v7 }
 0xec7   :  { %1365 = vrot.lane.b32.xlu1 %v1364_v9, %s2531_s7 }
 0xf39   :  { %v1366_v10 = vpop.permute.xlu1 %1365 }
 0xf3a   :  { %2177 = vmatmul.mubr.msk.f32.vlgmr.msra.gmra.mxu0 %vm796_vm8, %v1366_v10 }
 0xf3b   :  { %2191 = vmatpush3.msra.mxu0 %v2707_v31  ;;  %2198 = vmatprep.mubr.msk.f32.mxu0 %vm2529_vm3, %v2528_v42 }
 0xf3c   :  { %2192 = vmatprep.subr.mxu0 %v2528_v42 }
 0xf3d   :  { %2193 = vmatpush3.msra.mxu0 %v2715_v32 }
 0xf3e   :  { %2194 = vmatprep.subr.mxu0 %v2528_v42 }
 0xf3f   :  { %2195 = vmatpush3.msra.mxu0 %v2720_v33 }
 0xf40   :  { %2196 = vmatprep.subr.mxu0 %v2528_v42 }
 0xf41   :  { %2197 = vmatpush3.msra.mxu0 %v2727_v34 }
 0xffa   :  { %v1435_v13 = vpop.f32.mrf.mxu0 }
 0xffb   :  { %v1440_v15 = vrot.slane %v1435_v13, 1  ;;  %v1443_v16 = vadd.f32 %v1435_v13, %v1361_v12 }
 0xffc   :  { %v2178_v18 = vpop.f32.mrf.mxu0 }
 0xffd   :  { %v1444_v19 = vadd.f32 %v1440_v15, %v1362_v17  ;;  %2329 = vtanh.f32 %v1443_v16  ;;  %v2029_v22 = vmul.f32 -1.442695, %v1443_v16 }
 0xfff   :  { %2331 = vtanh.f32 %v1444_v19  ;;  %v2030_v23 = vmul.f32 -1.442695, %v1444_v19 }
0x1000   :  { %2333 = vpow2.f32 %v2029_v22 }
0x1001   :  { %2335 = vpow2.f32 %v2030_v23 }
0x100a   :  { %v2330_v20 = vpop.eup %2329 }
0x100b   :  { %1463 = vrot.lane.b32.xlu1 %v2330_v20, %s2530_s25 }
0x100c   :  { %v2332_v21 = vpop.eup %2331 }
0x100d   :  { %1465 = vrot.lane.b32.xlu0 %v2332_v21, %s2530_s25  ;;  %v2334_v24 = vpop.eup %2333 }
0x100e   :  { %v2336_v25 = vpop.eup %2335  ;;  %v1451_v26 = vadd.f32 1.0, %v2334_v24 }
0x100f   :  { %v1452_v29 = vadd.f32 1.0, %v2336_v25 }
0x1010   :  { %2337 = vrcp.f32 %v1451_v26 }
0x1011   :  { %2339 = vrcp.f32 %v1452_v29 }
0x101d   :  { %v2338_v30 = vpop.eup %2337 }
0x101e   :  { %v2340_v37 = vpop.eup %2339  ;;  %v1459_v40 = vmul.f32 %v2338_v30, %v1337_v60 }
0x101f   :  { %v1460_v44 = vmul.f32 %v2340_v37, %v1338_v63 }
0x107d   :  { %v1464_v35 = vpop.permute.xlu1 %1463 }
0x107e   :  { %v1469_v36 = vmul.f32 %v2338_v30, %v1464_v35  ;;  %v1645_v35 = vld [vmem:[#allocation2 + $0x6] sm:$0x1] }
0x107f   :  { %v1466_v38 = vpop.permute.xlu0 %1465 }
0x1080   :  { %1473 = vrot.lane.b32.xlu1 %v1469_v36, %s2531_s7  ;;  %v1470_v39 = vmul.f32 %v2340_v37, %v1466_v38 }
0x1082   :  { %1475 = vrot.lane.b32.xlu0 %v1470_v39, %s2531_s7  ;;  %v1646_v39 = vld [vmem:[#allocation2 + $0xe] sm:$0x1] }
0x10f2   :  { %v1474_v41 = vpop.permute.xlu1 %1473 }
0x10f3   :  { %v1479_v43 = vadd.f32 %v1474_v41, %v1459_v40 }
0x10f4   :  { %v1476_v45 = vpop.permute.xlu0 %1475 }
0x10f5   :  { %2341 = vtanh.f32 %v1479_v43  ;;  %v1480_v46 = vadd.f32 %v1476_v45, %v1460_v44 }
0x10f7   :  { %2343 = vtanh.f32 %v1480_v46 }
0x1102   :  { %v2342_v47 = vpop.eup %2341 }
0x1103   :  { %1485 = vrot.lane.b32.xlu1 %v2342_v47, %s2530_s25 }
0x1104   :  { %v2344_v2 = vpop.eup %2343 }
0x1105   :  { %1487 = vrot.lane.b32.xlu0 %v2344_v2, %s2530_s25 }
0x1175   :  { %v1486_v48 = vpop.permute.xlu1 %1485 }
0x1176   :  { %v2870_v3 = vmul.f32 %v2338_v30, %v1486_v48 }
0x1177   :  { %v1488_v49 = vpop.permute.xlu0 %1487 }
0x1178   :  { %v2868_v50 = vmul.f32 %v2340_v37, %v1488_v49 }
0x117a   :  { %v1505_v53 = vrot.slane %v2868_v50, 7 }
0x117c   :  { %v1506_v54 = vsel %vm523_vm5, %v1505_v53, %v2870_v3 }
0x117d   :  { %1507 = vrot.lane.b32.xlu0 %v1506_v54, %s2531_s7 }
0x11ef   :  { %v1508_v55 = vpop.permute.xlu0 %1507 }
0x11f0   :  { %2188 = vmatmul.mubr.msk.f32.vlgmr.msra.gmra.mxu1 %vm796_vm8, %v1508_v55 }
0x11f1   :  { %2202 = vmatpush3.msra.mxu1 %v2707_v31  ;;  %2209 = vmatprep.mubr.msk.f32.mxu1 %vm2529_vm3, %v2528_v42  ;;  %v1504_v31 = vld [vmem:[#allocation2 + $0xd] sm:$0x1] }
0x11f2   :  { %2203 = vmatprep.subr.mxu1 %v2528_v42 }
0x11f3   :  { %2204 = vmatpush3.msra.mxu1 %v2715_v32 }
0x11f4   :  { %2205 = vmatprep.subr.mxu1 %v2528_v42 }
0x11f5   :  { %2206 = vmatpush3.msra.mxu1 %v2720_v33 }
0x11f6   :  { %2207 = vmatprep.subr.mxu1 %v2528_v42 }
0x11f7   :  { %2208 = vmatpush3.msra.mxu1 %v2727_v34 }
0x12b0   :  { %v1577_v57 = vpop.f32.mrf.mxu1 }
0x12b1   :  { %v1582_v58 = vrot.slane %v1577_v57, 1  ;;  %v1585_v59 = vadd.f32 %v1577_v57, %v1503_v56 }
0x12b2   :  { %v2189_v60 = vpop.f32.mrf.mxu1 }
0x12b3   :  { %v1586_v61 = vadd.f32 %v1582_v58, %v1504_v31  ;;  %2345 = vtanh.f32 %v1585_v59  ;;  %v2032_v33 = vmul.f32 -1.442695, %v1585_v59 }
0x12b5   :  { %2347 = vtanh.f32 %v1586_v61  ;;  %v2033_v63 = vmul.f32 -1.442695, %v1586_v61 }
0x12b6   :  { %2349 = vpow2.f32 %v2032_v33 }
0x12b7   :  { %2351 = vpow2.f32 %v2033_v63 }
0x12c0   :  { %v2346_v62 = vpop.eup %2345 }
0x12c1   :  { %1605 = vrot.lane.b32.xlu0 %v2346_v62, %s2530_s25 }
0x12c2   :  { %v2348_v32 = vpop.eup %2347 }
0x12c3   :  { %1607 = vrot.lane.b32.xlu1 %v2348_v32, %s2530_s25  ;;  %v2350_v42 = vpop.eup %2349 }
0x12c4   :  { %v2352_v34 = vpop.eup %2351  ;;  %v1593_v0 = vadd.f32 1.0, %v2350_v42 }
0x12c5   :  { %v1594_v1 = vadd.f32 1.0, %v2352_v34 }
0x12c6   :  { %2353 = vrcp.f32 %v1593_v0 }
0x12c7   :  { %2355 = vrcp.f32 %v1594_v1 }
0x12d3   :  { %v2354_v4 = vpop.eup %2353 }
0x12d4   :  { %v2356_v9 = vpop.eup %2355  ;;  %v1601_v13 = vmul.f32 %v2354_v4, %v1479_v43 }
0x12d5   :  { %v1602_v17 = vmul.f32 %v2356_v9, %v1480_v46 }
0x1333   :  { %v1606_v5 = vpop.permute.xlu0 %1605 }
0x1334   :  { %v1611_v8 = vmul.f32 %v2354_v4, %v1606_v5 }
0x1335   :  { %v1608_v10 = vpop.permute.xlu1 %1607 }
0x1336   :  { %1615 = vrot.lane.b32.xlu0 %v1611_v8, %s2531_s7  ;;  %v1612_v12 = vmul.f32 %v2356_v9, %v1608_v10 }
0x1338   :  { %1617 = vrot.lane.b32.xlu1 %v1612_v12, %s2531_s7 }
0x13a8   :  { %v1616_v15 = vpop.permute.xlu0 %1615 }
0x13a9   :  { %v1621_v16 = vadd.f32 %v1616_v15, %v1601_v13  ;;  %v1788_v15 = vld [vmem:[#allocation2 + $0xf] sm:$0x1] }
0x13aa   :  { %v1618_v18 = vpop.permute.xlu1 %1617 }
0x13ab   :  { %2357 = vtanh.f32 %v1621_v16  ;;  %v1622_v19 = vadd.f32 %v1618_v18, %v1602_v17 }
0x13ad   :  { %2359 = vtanh.f32 %v1622_v19 }
0x13b8   :  { %v2358_v20 = vpop.eup %2357 }
0x13b9   :  { %1627 = vrot.lane.b32.xlu0 %v2358_v20, %s2530_s25 }
0x13ba   :  { %v2360_v21 = vpop.eup %2359 }
0x13bb   :  { %1629 = vrot.lane.b32.xlu1 %v2360_v21, %s2530_s25 }
0x142b   :  { %v1628_v22 = vpop.permute.xlu0 %1627 }
0x142c   :  { %v2894_v25 = vmul.f32 %v2354_v4, %v1628_v22 }
0x142d   :  { %v1630_v23 = vpop.permute.xlu1 %1629 }
0x142e   :  { %v2892_v24 = vmul.f32 %v2356_v9, %v1630_v23  ;;  %v1787_v9 = vld [vmem:[#allocation2 + $0x7] sm:$0x1] }
0x1430   :  { %v1647_v26 = vrot.slane %v2892_v24, 7 }
0x1432   :  { %v1648_v29 = vsel %vm523_vm5, %v1647_v26, %v2894_v25 }
0x1433   :  { %1649 = vrot.lane.b32.xlu1 %v1648_v29, %s2531_s7 }
0x14a5   :  { %v1650_v30 = vpop.permute.xlu1 %1649 }
0x14a6   :  { %2199 = vmatmul.mubr.msk.f32.vlgmr.msra.gmra.mxu0 %vm796_vm8, %v1650_v30 }
0x1566   :  { %v1719_v36 = vpop.f32.mrf.mxu0 }
0x1567   :  { %v1724_v37 = vrot.slane %v1719_v36, 1  ;;  %v1727_v38 = vadd.f32 %v1719_v36, %v1645_v35 }
0x1568   :  { %v2200_v40 = vpop.f32.mrf.mxu0 }
0x1569   :  { %v1728_v41 = vadd.f32 %v1724_v37, %v1646_v39  ;;  %2361 = vtanh.f32 %v1727_v38  ;;  %v2035_v45 = vmul.f32 -1.442695, %v1727_v38 }
0x156b   :  { %2363 = vtanh.f32 %v1728_v41  ;;  %v2036_v46 = vmul.f32 -1.442695, %v1728_v41 }
0x156c   :  { %2365 = vpow2.f32 %v2035_v45 }
0x156d   :  { %2367 = vpow2.f32 %v2036_v46 }
0x1576   :  { %v2362_v43 = vpop.eup %2361 }
0x1577   :  { %1747 = vrot.lane.b32.xlu1 %v2362_v43, %s2530_s25 }
0x1578   :  { %v2364_v44 = vpop.eup %2363 }
0x1579   :  { %1749 = vrot.lane.b32.xlu0 %v2364_v44, %s2530_s25  ;;  %v2366_v47 = vpop.eup %2365 }
0x157a   :  { %v2368_v2 = vpop.eup %2367  ;;  %v1735_v48 = vadd.f32 1.0, %v2366_v47 }
0x157b   :  { %v1736_v49 = vadd.f32 1.0, %v2368_v2 }
0x157c   :  { %2369 = vrcp.f32 %v1735_v48 }
0x157d   :  { %2371 = vrcp.f32 %v1736_v49 }
0x1589   :  { %v2370_v53 = vpop.eup %2369 }
0x158a   :  { %v2372_v56 = vpop.eup %2371  ;;  %v1743_v59 = vmul.f32 %v2370_v53, %v1621_v16 }
0x158b   :  { %v1744_v61 = vmul.f32 %v2372_v56, %v1622_v19 }
0x15e9   :  { %v1748_v54 = vpop.permute.xlu1 %1747 }
0x15ea   :  { %v1753_v55 = vmul.f32 %v2370_v53, %v1748_v54 }
0x15eb   :  { %v1750_v57 = vpop.permute.xlu0 %1749 }
0x15ec   :  { %1757 = vrot.lane.b32.xlu1 %v1753_v55, %s2531_s7  ;;  %v1754_v58 = vmul.f32 %v2372_v56, %v1750_v57 }
0x15ee   :  { %1759 = vrot.lane.b32.xlu0 %v1754_v58, %s2531_s7 }
0x165e   :  { %v1758_v31 = vpop.permute.xlu1 %1757 }
0x165f   :  { %v1763_v60 = vadd.f32 %v1758_v31, %v1743_v59 }
0x1660   :  { %v1760_v62 = vpop.permute.xlu0 %1759 }
0x1661   :  { %2373 = vtanh.f32 %v1763_v60  ;;  %v1764_v32 = vadd.f32 %v1760_v62, %v1744_v61 }
0x1663   :  { %2375 = vtanh.f32 %v1764_v32 }
0x166e   :  { %v2374_v33 = vpop.eup %2373 }
0x166f   :  { %1769 = vrot.lane.b32.xlu1 %v2374_v33, %s2530_s25 }
0x1670   :  { %v2376_v63 = vpop.eup %2375 }
0x1671   :  { %1771 = vrot.lane.b32.xlu0 %v2376_v63, %s2530_s25 }
0x16e1   :  { %v1770_v42 = vpop.permute.xlu1 %1769 }
0x16e2   :  { %v1775_v1 = vmul.f32 %v2370_v53, %v1770_v42 }
0x16e3   :  { %v1772_v34 = vpop.permute.xlu0 %1771 }
0x16e4   :  { %v1776_v0 = vmul.f32 %v2372_v56, %v1772_v34 }
0x16e6   :  { %v1789_v4 = vrot.slane %v1776_v0, 7 }
0x16e8   :  { %v1790_v5 = vsel %vm523_vm5, %v1789_v4, %v1775_v1 }
0x16e9   :  { %1791 = vrot.lane.b32.xlu0 %v1790_v5, %s2531_s7 }
0x175b   :  { %v1792_v8 = vpop.permute.xlu0 %1791 }
0x175c   :  { %2210 = vmatmul.mubr.msk.f32.vlgmr.msra.gmra.mxu1 %vm796_vm8, %v1792_v8 }
0x181c   :  { %v1861_v10 = vpop.f32.mrf.mxu1 }
0x181d   :  { %v1866_v12 = vrot.slane %v1861_v10, 1  ;;  %v1869_v13 = vadd.f32 %v1861_v10, %v1787_v9 }
0x181e   :  { %v2211_v16 = vpop.f32.mrf.mxu1 }
0x181f   :  { %v1870_v17 = vadd.f32 %v1866_v12, %v1788_v15  ;;  %2377 = vtanh.f32 %v1869_v13  ;;  %v2038_v20 = vmul.f32 -1.442695, %v1869_v13 }
0x1821   :  { %2379 = vtanh.f32 %v1870_v17  ;;  %v2039_v21 = vmul.f32 -1.442695, %v1870_v17 }
0x1822   :  { %2381 = vpow2.f32 %v2038_v20 }
0x1823   :  { %2383 = vpow2.f32 %v2039_v21 }
0x182c   :  { %v2378_v18 = vpop.eup %2377 }
0x182d   :  { %1889 = vrot.lane.b32.xlu1 %v2378_v18, %s2530_s25 }
0x182e   :  { %v2380_v19 = vpop.eup %2379 }
0x182f   :  { %1891 = vrot.lane.b32.xlu0 %v2380_v19, %s2530_s25  ;;  %v2382_v22 = vpop.eup %2381 }
0x1830   :  { %v2384_v23 = vpop.eup %2383  ;;  %v1877_v26 = vadd.f32 1.0, %v2382_v22 }
0x1831   :  { %v1878_v29 = vadd.f32 1.0, %v2384_v23 }
0x1832   :  { %2385 = vrcp.f32 %v1877_v26 }
0x1833   :  { %2387 = vrcp.f32 %v1878_v29 }
0x183f   :  { %v2386_v30 = vpop.eup %2385 }
0x1840   :  { %v2388_v37 = vpop.eup %2387  ;;  %v1885_v40 = vmul.f32 %v2386_v30, %v1763_v60 }
0x1841   :  { %v1886_v44 = vmul.f32 %v2388_v37, %v1764_v32 }
0x189f   :  { %v1890_v35 = vpop.permute.xlu1 %1889 }
0x18a0   :  { %v1895_v36 = vmul.f32 %v2386_v30, %v1890_v35 }
0x18a1   :  { %v1892_v38 = vpop.permute.xlu0 %1891 }
0x18a2   :  { %1899 = vrot.lane.b32.xlu1 %v1895_v36, %s2531_s7  ;;  %v1896_v39 = vmul.f32 %v2388_v37, %v1892_v38 }
0x18a4   :  { %1901 = vrot.lane.b32.xlu0 %v1896_v39, %s2531_s7 }
0x1914   :  { %v1900_v41 = vpop.permute.xlu1 %1899 }
0x1915   :  { %v1905_v43 = vadd.f32 %v1900_v41, %v1885_v40 }
0x1916   :  { %v1902_v45 = vpop.permute.xlu0 %1901 }
0x1917   :  { %2389 = vtanh.f32 %v1905_v43  ;;  %v1906_v46 = vadd.f32 %v1902_v45, %v1886_v44 }
0x1919   :  { %2391 = vtanh.f32 %v1906_v46 }
0x1924   :  { %v2390_v47 = vpop.eup %2389 }
0x1925   :  { %1911 = vrot.lane.b32.xlu1 %v2390_v47, %s2530_s25 }
0x1926   :  { %v2392_v2 = vpop.eup %2391 }
0x1927   :  { %1913 = vrot.lane.b32.xlu0 %v2392_v2, %s2530_s25 }
0x1929   :  { %926 = vrot.lane.b32.xlu1 %v2771_v14, %s2531_s7 }
0x192b   :  { %928 = vrot.lane.b32.xlu0 %v2768_v11, %s2531_s7 }
0x192d   :  { %1069 = vrot.lane.b32.xlu1 %v2796_v52, %s2531_s7 }
0x192f   :  { %1071 = vrot.lane.b32.xlu0 %v2794_v51, %s2531_s7 }
0x1931   :  { %1211 = vrot.lane.b32.xlu1 %v2821_v28, %s2531_s7 }
0x1933   :  { %1213 = vrot.lane.b32.xlu0 %v2819_v27, %s2531_s7 }
0x1935   :  { %1353 = vrot.lane.b32.xlu1 %v2846_v7, %s2531_s7 }
0x1937   :  { %1355 = vrot.lane.b32.xlu0 %v2844_v6, %s2531_s7 }
0x1939   :  { %1495 = vrot.lane.b32.xlu1 %v2870_v3, %s2531_s7 }
0x193b   :  { %1497 = vrot.lane.b32.xlu0 %v2868_v50, %s2531_s7 }
0x193d   :  { %1637 = vrot.lane.b32.xlu1 %v2894_v25, %s2531_s7 }
0x193f   :  { %1639 = vrot.lane.b32.xlu0 %v2892_v24, %s2531_s7 }
0x1941   :  { %1779 = vrot.lane.b32.xlu1 %v1775_v1, %s2531_s7 }
0x1943   :  { %1781 = vrot.lane.b32.xlu0 %v1776_v0, %s2531_s7 }
0x1997   :  { %v1912_v11 = vpop.permute.xlu1 %1911 }
0x1998   :  { %v1917_v14 = vmul.f32 %v2386_v30, %v1912_v11 }
0x1999   :  { %2444 = shalt.err (!%p2441_p0)
}
0x199a   :  { %s2533_s0 = smov 4   ;;  %v1914_v51 = vpop.permute.xlu0 %1913  ;;  %1921 = vrot.lane.b32.xlu1 %v1917_v14, %s2531_s7  ;;  %s2534_s12 = smov 96  }
0x199b   :  { %1988 = dma.vmem_to_hbm [thread:$0]  %s1983_s27, 128, %s2999_s11, [#allocation13], %s2530_s25, %s2530_s25, %s2533_s0   ;;  %v1918_v52 = vmul.f32 %v2388_v37, %v1914_v51  ;;  %v927_v27 = vpop.permute.xlu1 %926 }
0x199c   :  { %933 = vst.msk [vmem:[#allocation8] sm:$0x1] %vm932_vm9, %v927_v27  ;;  %s2535_s11 = smov [#allocation9]   ;;  %s2536_s13 = smov [#allocation8]  }
0x199d   :  { %1923 = vrot.lane.b32.xlu0 %v1918_v52, %s2531_s7  ;;  %s1958_s5 = sshll.u32 %s2535_s11, 4  ;;  %s1946_s1 = sshll.u32 %s2536_s13, 4  ;;  %s1959_s5 = int_to_ptr.vmem [resolvable:$true] %s1958_s5  ;;  %s1947_s1 = int_to_ptr.vmem [resolvable:$true] %s1946_s1 }
0x199e   :  { %v929_v28 = vpop.permute.xlu0 %928  ;;  %1933 = vrot.lane.b32.xlu1 %v1905_v43, %s2534_s12  ;;  %s2537_s14 = smov [#allocation11]   ;;  %s2453_s15 = scalar_lea.vmem %s1959_s5, 32 }
0x199f   :  { %934 = vst.msk [vmem:[#allocation8 + $0x8] sm:$0x1] %vm932_vm9, %v929_v28  ;;  %v1070_v6 = vpop.permute.xlu1 %1069  ;;  %s1970_s3 = sshll.u32 %s2537_s14, 4  ;;  %p2454_p1 = scmp.ne.s32.totalorder %s1959_s5, %s2453_s15  ;;  %s2967_s3 = int_to_ptr.vmem [resolvable:$true] %s1970_s3 }
0x19a0   :  { %1075 = vst.msk [vmem:[#allocation8 + $0x1] sm:$0x1] %vm932_vm9, %v1070_v6  ;;  %p2458_p2 = scmp.lt.s32.totalorder %s1959_s5, %s1959_s5  ;;  %p2459_p3 = scmp.lt.s32.totalorder %s2453_s15, %s2453_s15 }
0x19a1   :  { %1935 = vrot.lane.b32.xlu0 %v1906_v46, %s2534_s12 }
0x19a2   :  { %v1072_v7 = vpop.permute.xlu0 %1071  ;;  %p2460_p4 = por %p2459_p3, %p2458_p2 }
0x19a3   :  { %1076 = vst.msk [vmem:[#allocation8 + $0x9] sm:$0x1] %vm932_vm9, %v1072_v7  ;;  %v1212_v50 = vpop.permute.xlu1 %1211 }
0x19a4   :  { %1217 = vst.msk [vmem:[#allocation8 + $0x2] sm:$0x1] %vm932_vm9, %v1212_v50  ;;  %p2461_p5 = pnand %p2460_p4, %p2454_p1 }
0x19a6   :  { %v1214_v3 = vpop.permute.xlu0 %1213 }
0x19a7   :  { %1218 = vst.msk [vmem:[#allocation8 + $0xa] sm:$0x1] %vm932_vm9, %v1214_v3  ;;  %v1354_v24 = vpop.permute.xlu1 %1353 }
0x19a8   :  { %1359 = vst.msk [vmem:[#allocation8 + $0x3] sm:$0x1] %vm932_vm9, %v1354_v24 }
0x19aa   :  { %v1356_v25 = vpop.permute.xlu0 %1355 }
0x19ab   :  { %1360 = vst.msk [vmem:[#allocation8 + $0xb] sm:$0x1] %vm932_vm9, %v1356_v25  ;;  %v1496_v48 = vpop.permute.xlu1 %1495 }
0x19ac   :  { %1501 = vst.msk [vmem:[#allocation8 + $0x4] sm:$0x1] %vm932_vm9, %v1496_v48 }
0x19ae   :  { %v1498_v49 = vpop.permute.xlu0 %1497 }
0x19af   :  { %1502 = vst.msk [vmem:[#allocation8 + $0xc] sm:$0x1] %vm932_vm9, %v1498_v49  ;;  %v1638_v53 = vpop.permute.xlu1 %1637 }
0x19b0   :  { %1643 = vst.msk [vmem:[#allocation8 + $0x5] sm:$0x1] %vm932_vm9, %v1638_v53 }
0x19b2   :  { %v1640_v54 = vpop.permute.xlu0 %1639 }
0x19b3   :  { %1644 = vst.msk [vmem:[#allocation8 + $0xd] sm:$0x1] %vm932_vm9, %v1640_v54  ;;  %v1780_v55 = vpop.permute.xlu1 %1779 }
0x19b4   :  { %1785 = vst.msk [vmem:[#allocation8 + $0x6] sm:$0x1] %vm932_vm9, %v1780_v55 }
0x19b6   :  { %v1782_v56 = vpop.permute.xlu0 %1781 }
0x19b7   :  { %1786 = vst.msk [vmem:[#allocation8 + $0xe] sm:$0x1] %vm932_vm9, %v1782_v56 }
0x1a0c   :  { %v1922_v57 = vpop.permute.xlu1 %1921 }
0x1a0d   :  { %1927 = vst.msk [vmem:[#allocation8 + $0x7] sm:$0x1] %vm932_vm9, %v1922_v57  ;;  %1929 = vst.msk [vmem:[#allocation9] sm:$0x1] %vm932_vm9, %v1922_v57 }
0x1a0f   :  { %v1924_v58 = vpop.permute.xlu0 %1923 }
0x1a10   :  { %1928 = vst.msk [vmem:[#allocation8 + $0xf] sm:$0x1] %vm932_vm9, %v1924_v58  ;;  %1930 = vst.msk [vmem:[#allocation9 + $0x1] sm:$0x1] %vm932_vm9, %v1924_v58  ;;  %v1934_v59 = vpop.permute.xlu1 %1933 }
0x1a11   :  { %1939 = vst.msk [vmem:[#allocation11] sm:$0x1] %vm932_vm9, %v1934_v59 }
0x1a12   :  { %2464 = shalt.err (!%p2461_p5)
}
0x1a13   :  { %s2538_s2 = smov 16   ;;  %s2539_s4 = smov 1  }
0x1a14   :  { %1964 = dma.vmem_to_hbm [thread:$0]  %s1959_s5, 32, %s2997_s9, [#allocation10], %s2538_s2, %s2538_s2, %s2539_s4  }
0x1a15   :  { %s2473_s18 = scalar_lea.vmem %s1947_s1, 256  ;;  %p2478_p7 = scmp.lt.s32.totalorder %s1947_s1, %s1947_s1 }
0x1a16   :  { %p2474_p6 = scmp.ne.s32.totalorder %s1947_s1, %s2473_s18  ;;  %p2479_p8 = scmp.lt.s32.totalorder %s2473_s18, %s2473_s18 }
0x1a18   :  { %p2480_p9 = por %p2479_p8, %p2478_p7 }
0x1a1a   :  { %p2481_p10 = pnand %p2480_p9, %p2474_p6 }
0x1a1c   :  { %2484 = shalt.err (!%p2481_p10)
}
0x1a1d   :  { %1952 = dma.vmem_to_hbm [thread:$0]  %s1947_s1, 256, %s2996_s8, [#allocation5], %s2524_s20, %s2524_s20, %s2525_s21   ;;  %v1936_v31 = vpop.permute.xlu0 %1935 }
0x1a1e   :  { %1940 = vst.msk [vmem:[#allocation11 + $0x1] sm:$0x1] %vm932_vm9, %v1936_v31  ;;  %s2493_s9 = scalar_lea.vmem %s2967_s3, 32  ;;  %p2498_p12 = scmp.lt.s32.totalorder %s2967_s3, %s2967_s3 }
0x1a1f   :  { %p2494_p11 = scmp.ne.s32.totalorder %s2967_s3, %s2493_s9  ;;  %p2499_p13 = scmp.lt.s32.totalorder %s2493_s9, %s2493_s9 }
0x1a21   :  { %p2500_p0 = por %p2499_p13, %p2498_p12 }
0x1a23   :  { %p2501_p1 = pnand %p2500_p0, %p2494_p11 }
0x1a25   :  { %2504 = shalt.err (!%p2501_p1)
}
0x1a26   :  { %1976 = dma.vmem_to_hbm [thread:$0]  %s2967_s3, 32, %s2998_s10, [#allocation10], %s2538_s2, %s2538_s2, %s2539_s4  }
0x1a27   :  { %2517 = dma.done.wait [#allocation5], 256  }
0x1a28   :  { %2518 = vsyncadd [#allocation5], 4294967040 }
0x1a29   :  { %2519 = dma.done.wait [#allocation10], 64  }
0x1a2a   :  { %2520 = vsyncadd [#allocation10], 4294967232 }
0x1a2b   :  { %2521 = dma.done.wait [#allocation13], 128  }
0x1a2c   :  { %2522 = vsyncadd [#allocation13], 4294967168 }
0x1a2d   :  { %2001 = vsyncpa [#allocation4], 1 }
0x1a2e   :  { %2002 = vsyncpa [#allocation7], 1 }
0x1a2f   :  { %2003 = vsyncpa [#allocation5], 1 }
0x1a30   :  { %2004 = vsyncpa [#allocation10], 1 }
0x1a31   :  { %2005 = vsyncpa [#allocation13], 1 }

</bundles_post_ra>
